<compile_context>
chip_gen: v6e
topology: v6e:2x2x1
jax: 0.10.0
libtpu: 0.0.40
codegen_flags: <defaults>
</compile_context>

<pallas_src>
import math

import jax
import jax.numpy as jnp
from jax import lax
from jax.experimental import pallas as pl
from jax.experimental.pallas import tpu as pltpu


def _round_up(v, m):
    return ((v + m - 1) // m) * m


# ----------------------------------------------------------------------------
# Exact (erf-based) GELU.  erf via the Abramowitz & Stegun 7.1.26 polynomial
# (max abs error ~1.5e-7), matching PyTorch's default nn.GELU to fp32 level.
# Inside the kernel the divide is an EUP approx reciprocal (free slot).
# ----------------------------------------------------------------------------
def _gelu_erf(x, *, in_kernel):
    a1, a2, a3, a4, a5 = (0.254829592, -0.284496736, 1.421413741,
                          -1.453152027, 1.061405429)
    pc = 0.3275911
    xs = x * 0.7071067811865476
    sgn = jnp.where(xs >= 0.0, 1.0, -1.0)
    ax = jnp.abs(xs)
    denom = 1.0 + pc * ax
    t = pl.reciprocal(denom, approx=True) if in_kernel else 1.0 / denom
    poly = ((((a5 * t + a4) * t + a3) * t + a2) * t + a1) * t
    erf = sgn * (1.0 - poly * jnp.exp(-ax * ax))
    return 0.5 * x * (1.0 + erf)


# ----------------------------------------------------------------------------
# Pallas kernel: one grid step processes Bt full batch elements.
# 1x1 convs are MXU matmuls over the flat (Bt*H*W, channels) view; the 3x3
# depthwise conv reads 9 static slices of a zero-haloed VMEM scratch.
# ----------------------------------------------------------------------------
def _make_kernel(h, w, mm_dtype):
    def kernel(x_ref, w1_ref, b1_ref, wdw_ref, bdw_ref, w2_ref, b2_ref,
               o_ref, ypad_ref):
        bt, n, c = x_ref.shape
        fp = w1_ref.shape[1]
        cp = w2_ref.shape[1]
        rows = bt * n

        # ---- conv1: 1x1 pointwise (MXU), BN/bias pre-folded into w1/b1 ----
        x2 = x_ref[...].reshape(rows, c)              # free view (C minor dim)
        y = jnp.dot(x2.astype(mm_dtype), w1_ref[...],
                    preferred_element_type=jnp.float32)
        y = _gelu_erf(y + b1_ref[...], in_kernel=True)

        # ---- dwconv: 3x3 depthwise, stride 1, pad 1 (bias/BN folded) ----
        # Zero-haloed scratch: zero once per step, write interior, read taps.
        ypad_ref[...] = jnp.zeros(ypad_ref.shape, jnp.float32)
        ypad_ref[:, 1:h + 1, 1:w + 1, :] = y.reshape(bt, h, w, fp)

        wdw = wdw_ref[...]                            # (3, 3, Fp), fp32
        wtap = [[wdw[di, dj] for dj in range(3)] for di in range(3)]  # hoisted

        parts = []                                    # 3 independent chains
        for di in range(3):
            part = ypad_ref[:, di:di + h, 0:w, :] * wtap[di][0]
            part = part + ypad_ref[:, di:di + h, 1:w + 1, :] * wtap[di][1]
            part = part + ypad_ref[:, di:di + h, 2:w + 2, :] * wtap[di][2]
            parts.append(part)
        acc = (parts[0] + parts[1]) + (parts[2] + bdw_ref[0])
        acc = _gelu_erf(acc, in_kernel=True)

        # ---- conv2: 1x1 pointwise (MXU) + folded BN ----
        z = jnp.dot(acc.reshape(rows, fp).astype(mm_dtype), w2_ref[...],
                    preferred_element_type=jnp.float32)
        z = z + b2_ref[...]
        o_ref[...] = z.reshape(bt, n, cp)             # lane-dense (Cp%128==0)

    return kernel


# ----------------------------------------------------------------------------
# Host-side parameter prep: fold BN + biases, zero-pad channel dims to
# multiples of 128 (lane-dense), cast matmul weights to the MXU dtype.
# ----------------------------------------------------------------------------
def _fold_and_pad_params(p, mm_dtype):
    c, f = p["w1"].shape
    fp = _round_up(f, 128)
    cp = _round_up(c, 128)
    df, dc = fp - f, cp - c

    w1 = p["w1"] * p["s1"]                     # (C, F) * (1, F)
    b1 = p["b1"] * p["s1"] + p["t1"]           # (1, F)
    wdw = p["wdw"] * p["s2"][0]                # (3, 3, F) * (F,)
    bdw = p["bdw"] * p["s2"] + p["t2"]         # (1, F)
    w2 = p["w2"] * p["s3"]                     # (F, C) * (1, C)
    b2 = p["b2"] * p["s3"] + p["t3"]           # (1, C)

    w1 = jnp.pad(w1, ((0, 0), (0, df))).astype(mm_dtype)
    b1 = jnp.pad(b1, ((0, 0), (0, df)))
    wdw = jnp.pad(wdw, ((0, 0), (0, 0), (0, df)))
    bdw = jnp.pad(bdw, ((0, 0), (0, df)))
    w2 = jnp.pad(w2, ((0, df), (0, dc))).astype(mm_dtype)
    b2 = jnp.pad(b2, ((0, 0), (0, dc)))
    return w1, b1, wdw, bdw, w2, b2, fp, cp


def _pick_batch_tile(b, rows_per_image, fp, target_rows=512,
                     vmem_budget=8 << 20):
    """Largest divisor of b whose Bt*H*W stays near the MXU-friendly target
    and under a conservative per-step VMEM budget (~6 live fp32 (rows,Fp))."""
    cap_rows = max(rows_per_image, vmem_budget // (6 * 4 * fp))
    cap_rows = max(rows_per_image, min(target_rows, cap_rows))
    bt = 1
    for d in range(1, b + 1):
        if b % d == 0 and d * rows_per_image <= cap_rows:
            bt = d
    return bt


def dwffn_pallas(x, params, polar_bev_shape, matmul_dtype=jnp.bfloat16):
    b, n, c = x.shape
    h, w = polar_bev_shape
    assert n == h * w

    w1, b1, wdw, bdw, w2, b2, fp, cp = _fold_and_pad_params(params, matmul_dtype)

    bt = _pick_batch_tile(b, n, fp)
    grid = (b // bt,)

    out_p = pl.pallas_call(
        _make_kernel(h, w, matmul_dtype),
        out_shape=jax.ShapeDtypeStruct((b, n, cp), jnp.float32),
        grid_spec=pltpu.PrefetchScalarGridSpec(
            num_scalar_prefetch=0,
            grid=grid,
            in_specs=[
                pl.BlockSpec((bt, n, c), lambda i: (i, 0, 0)),   # x
                pl.BlockSpec((c, fp), lambda i: (0, 0)),         # w1 (folded)
                pl.BlockSpec((1, fp), lambda i: (0, 0)),         # b1 (folded)
                pl.BlockSpec((3, 3, fp), lambda i: (0, 0, 0)),   # wdw (folded)
                pl.BlockSpec((1, fp), lambda i: (0, 0)),         # bdw (folded)
                pl.BlockSpec((fp, cp), lambda i: (0, 0)),        # w2 (folded)
                pl.BlockSpec((1, cp), lambda i: (0, 0)),         # b2 (folded)
            ],
            out_specs=pl.BlockSpec((bt, n, cp), lambda i: (i, 0, 0)),
            scratch_shapes=[
                pltpu.VMEM((bt, h + 2, w + 2, fp), jnp.float32),  # halo buffer
            ],
        ),
        compiler_params=pltpu.CompilerParams(
            dimension_semantics=("parallel",)),
    )(x, w1, b1, wdw, bdw, w2, b2)

    return out_p[:, :, :c] if cp != c else out_p


# ----------------------------------------------------------------------------
# Pure-JAX reference (NHWC, unfolded params, exact GELU) for correctness only.
# ----------------------------------------------------------------------------
def dwffn_ref(x, p, polar_bev_shape):
    b, n, c = x.shape
    h, w = polar_bev_shape
    xhw = x.reshape(b, h, w, c)

    y = jnp.einsum("bhwc,cf->bhwf", xhw, p["w1"]) + p["b1"]
    y = y * p["s1"] + p["t1"]
    y = jax.nn.gelu(y, approximate=False)

    fdim = y.shape[-1]
    dw_kernel = p["wdw"].reshape(3, 3, 1, fdim)
    y = lax.conv_general_dilated(
        y, dw_kernel, window_strides=(1, 1), padding="SAME",
        dimension_numbers=("NHWC", "HWIO", "NHWC"),
        feature_group_count=fdim) + p["bdw"]
    y = y * p["s2"] + p["t2"]
    y = jax.nn.gelu(y, approximate=False)

    z = jnp.einsum("bhwf,fc->bhwc", y, p["w2"]) + p["b2"]
    z = z * p["s3"] + p["t3"]
    return z.reshape(b, n, c)


# ----------------------------------------------------------------------------
# Deterministic synthetic parameters (BN represented as scale/shift).
# ----------------------------------------------------------------------------
def init_params(key, d_model, d_ffn, eps=1e-5):
    ks = jax.random.split(key, 20)

    def bn_fold(kg, kb, km, kv, dim):
        gamma = 1.0 + 0.1 * jax.random.normal(kg, (1, dim), jnp.float32)
        beta = 0.05 * jax.random.normal(kb, (1, dim), jnp.float32)
        mean = 0.01 * jax.random.normal(km, (1, dim), jnp.float32)
        var = jax.random.uniform(kv, (1, dim), jnp.float32, 0.5, 1.5)
        scale = gamma / jnp.sqrt(var + eps)
        shift = beta - mean * scale
        return scale, shift

    p = {}
    p["w1"] = jax.random.normal(ks[0], (d_model, d_ffn), jnp.float32) / math.sqrt(d_model)
    p["b1"] = 0.02 * jax.random.normal(ks[1], (1, d_ffn), jnp.float32)
    p["s1"], p["t1"] = bn_fold(ks[2], ks[3], ks[4], ks[5], d_ffn)

    p["wdw"] = jax.random.normal(ks[6], (3, 3, d_ffn), jnp.float32) / 3.0
    p["bdw"] = 0.02 * jax.random.normal(ks[7], (1, d_ffn), jnp.float32)
    p["s2"], p["t2"] = bn_fold(ks[8], ks[9], ks[10], ks[11], d_ffn)

    p["w2"] = jax.random.normal(ks[12], (d_ffn, d_model), jnp.float32) / math.sqrt(d_ffn)
    p["b2"] = 0.02 * jax.random.normal(ks[13], (1, d_model), jnp.float32)
    p["s3"], p["t3"] = bn_fold(ks[14], ks[15], ks[16], ks[17], d_model)
    return p


if __name__ == "__main__":
    # Small shapes consistent with the module: d_model=16, d_ffn=32, BEV 8x8.
    B, H, W, C, FF = 2, 8, 8, 16, 32
    N = H * W

    key = jax.random.PRNGKey(0)
    kx, kp = jax.random.split(key)
    x = jax.random.normal(kx, (B, N, C), jnp.float32)
    params = init_params(kp, C, FF)

    ref = jax.block_until_ready(dwffn_ref(x, params, (H, W)))

    # fp32 MXU operands: tight check of the folded-BN / halo-scratch kernel.
    out32 = jax.block_until_ready(
        dwffn_pallas(x, params, (H, W), matmul_dtype=jnp.float32))
    assert out32.shape == (B, N, C)
    err32 = float(jnp.max(jnp.abs(out32 - ref)))
    assert jnp.allclose(out32, ref, atol=1e-2, rtol=1e-2), err32

    # bf16 MXU operands (perf default for v5e/v6e/v7x): looser tolerance.
    out16 = jax.block_until_ready(
        dwffn_pallas(x, params, (H, W), matmul_dtype=jnp.bfloat16))
    assert out16.shape == (B, N, C)
    err16 = float(jnp.max(jnp.abs(out16 - ref)))
    assert jnp.allclose(out16, ref, atol=1e-1, rtol=1e-1), err16

    print("KERNEL_OK")
</pallas_src>

<mosaic_0001>
module attributes {stable_mosaic.version = 11 : i64} {
  func.func @kernel(%arg0: i32, %arg1: memref<2x64x16xf32, #tpu.memory_space<vmem>>, %arg2: memref<16x128xf32, #tpu.memory_space<vmem>>, %arg3: memref<1x128xf32, #tpu.memory_space<vmem>>, %arg4: memref<3x3x128xf32, #tpu.memory_space<vmem>>, %arg5: memref<1x128xf32, #tpu.memory_space<vmem>>, %arg6: memref<128x128xf32, #tpu.memory_space<vmem>>, %arg7: memref<1x128xf32, #tpu.memory_space<vmem>>, %arg8: memref<2x64x128xf32, #tpu.memory_space<vmem>>, %arg9: memref<2x10x10x128xf32, #tpu.memory_space<vmem>>) attributes {dimension_semantics = [#tpu.dimension_semantics<parallel>], iteration_bounds = array<i64: 1>, scalar_prefetch = 0 : i64, scratch_operands = 1 : i64, tpu.core_type = #tpu.core_type<tc>, window_params = [{transform_indices = @transform_0, window_bounds = array<i64: 2, 64, 16>}, {pipeline_mode = #tpu.pipeline_mode<synchronous>, transform_indices = @transform_1, window_bounds = array<i64: 16, 128>}, {pipeline_mode = #tpu.pipeline_mode<synchronous>, transform_indices = @transform_2, window_bounds = array<i64: 1, 128>}, {pipeline_mode = #tpu.pipeline_mode<synchronous>, transform_indices = @transform_3, window_bounds = array<i64: 3, 3, 128>}, {pipeline_mode = #tpu.pipeline_mode<synchronous>, transform_indices = @transform_4, window_bounds = array<i64: 1, 128>}, {pipeline_mode = #tpu.pipeline_mode<synchronous>, transform_indices = @transform_5, window_bounds = array<i64: 128, 128>}, {pipeline_mode = #tpu.pipeline_mode<synchronous>, transform_indices = @transform_6, window_bounds = array<i64: 1, 128>}, {transform_indices = @transform_7, window_bounds = array<i64: 2, 64, 128>}]} {
    %c0 = arith.constant 0 : index
    %c0_0 = arith.constant 0 : index
    %c0_1 = arith.constant 0 : index
    %0 = vector.load %arg1[%c0, %c0_0, %c0_1] : memref<2x64x16xf32, #tpu.memory_space<vmem>>, vector<2x64x16xf32>
    %1 = vector.shape_cast %0 : vector<2x64x16xf32> to vector<128x16xf32>
    %c0_2 = arith.constant 0 : index
    %c0_3 = arith.constant 0 : index
    %2 = vector.load %arg2[%c0_2, %c0_3] : memref<16x128xf32, #tpu.memory_space<vmem>>, vector<16x128xf32>
    %cst = arith.constant dense<0.000000e+00> : vector<128x128xf32>
    %3 = tpu.matmul %1, %2, %cst {dimension_numbers = #tpu.dot_dimension_numbers<[1], [0], [0], [1], [0, 0, 1, 1], [], []>} : vector<128x16xf32>, vector<16x128xf32>, vector<128x128xf32> -> vector<128x128xf32>
    %c0_4 = arith.constant 0 : index
    %c0_5 = arith.constant 0 : index
    %4 = vector.load %arg3[%c0_4, %c0_5] : memref<1x128xf32, #tpu.memory_space<vmem>>, vector<1x128xf32>
    %5 = vector.broadcast %4 : vector<1x128xf32> to vector<128x128xf32>
    %6 = arith.addf %3, %5 : vector<128x128xf32>
    %cst_6 = arith.constant 0.707106769 : f32
    %7 = vector.broadcast %cst_6 : f32 to vector<128x128xf32>
    %8 = arith.mulf %6, %7 : vector<128x128xf32>
    %cst_7 = arith.constant 0.000000e+00 : f32
    %9 = vector.broadcast %cst_7 : f32 to vector<128x128xf32>
    %10 = arith.cmpf oge, %8, %9 : vector<128x128xf32>
    %cst_8 = arith.constant 1.000000e+00 : f32
    %cst_9 = arith.constant -1.000000e+00 : f32
    %11 = vector.broadcast %cst_8 : f32 to vector<128x128xf32>
    %12 = vector.broadcast %cst_9 : f32 to vector<128x128xf32>
    %13 = arith.select %10, %11, %12 : vector<128x128xi1>, vector<128x128xf32>
    %14 = math.absf %8 : vector<128x128xf32>
    %cst_10 = arith.constant 0.327591091 : f32
    %15 = vector.broadcast %cst_10 : f32 to vector<128x128xf32>
    %16 = arith.mulf %15, %14 : vector<128x128xf32>
    %cst_11 = arith.constant 1.000000e+00 : f32
    %17 = vector.broadcast %cst_11 : f32 to vector<128x128xf32>
    %18 = arith.addf %17, %16 : vector<128x128xf32>
    %19 = tpu.reciprocal %18 {approx = true} : vector<128x128xf32> -> vector<128x128xf32>
    %cst_12 = arith.constant 1.06140542 : f32
    %20 = vector.broadcast %cst_12 : f32 to vector<128x128xf32>
    %21 = arith.mulf %20, %19 : vector<128x128xf32>
    %cst_13 = arith.constant -1.45315206 : f32
    %22 = vector.broadcast %cst_13 : f32 to vector<128x128xf32>
    %23 = arith.addf %21, %22 : vector<128x128xf32>
    %24 = arith.mulf %23, %19 : vector<128x128xf32>
    %cst_14 = arith.constant 1.42141378 : f32
    %25 = vector.broadcast %cst_14 : f32 to vector<128x128xf32>
    %26 = arith.addf %24, %25 : vector<128x128xf32>
    %27 = arith.mulf %26, %19 : vector<128x128xf32>
    %cst_15 = arith.constant -0.284496725 : f32
    %28 = vector.broadcast %cst_15 : f32 to vector<128x128xf32>
    %29 = arith.addf %27, %28 : vector<128x128xf32>
    %30 = arith.mulf %29, %19 : vector<128x128xf32>
    %cst_16 = arith.constant 0.254829586 : f32
    %31 = vector.broadcast %cst_16 : f32 to vector<128x128xf32>
    %32 = arith.addf %30, %31 : vector<128x128xf32>
    %33 = arith.mulf %32, %19 : vector<128x128xf32>
    %cst_17 = arith.constant 0.000000e+00 : f32
    %34 = vector.broadcast %cst_17 : f32 to vector<128x128xf32>
    %35 = arith.subf %34, %14 : vector<128x128xf32>
    %36 = arith.mulf %35, %14 : vector<128x128xf32>
    %37 = math.exp %36 : vector<128x128xf32>
    %38 = arith.mulf %33, %37 : vector<128x128xf32>
    %cst_18 = arith.constant 1.000000e+00 : f32
    %39 = vector.broadcast %cst_18 : f32 to vector<128x128xf32>
    %40 = arith.subf %39, %38 : vector<128x128xf32>
    %41 = arith.mulf %13, %40 : vector<128x128xf32>
    %cst_19 = arith.constant 5.000000e-01 : f32
    %42 = vector.broadcast %cst_19 : f32 to vector<128x128xf32>
    %43 = arith.mulf %42, %6 : vector<128x128xf32>
    %cst_20 = arith.constant 1.000000e+00 : f32
    %44 = vector.broadcast %cst_20 : f32 to vector<128x128xf32>
    %45 = arith.addf %44, %41 : vector<128x128xf32>
    %46 = arith.mulf %43, %45 : vector<128x128xf32>
    %cst_21 = arith.constant 0.000000e+00 : f32
    %47 = vector.broadcast %cst_21 : f32 to vector<2x10x10x128xf32>
    %c0_22 = arith.constant 0 : index
    %c0_23 = arith.constant 0 : index
    %c0_24 = arith.constant 0 : index
    %c0_25 = arith.constant 0 : index
    %48 = vector.load %arg9[%c0_22, %c0_23, %c0_24, %c0_25] : memref<2x10x10x128xf32, #tpu.memory_space<vmem>>, vector<2x10x10x128xf32>
    tpu.vector_store %arg9[%c0_22, %c0_23, %c0_24, %c0_25], %47 {strides = array<i32>} : memref<2x10x10x128xf32, #tpu.memory_space<vmem>>, vector<2x10x10x128xf32>,
    %49 = vector.shape_cast %46 : vector<128x128xf32> to vector<2x8x8x128xf32>
    %c0_26 = arith.constant 0 : index
    %c1 = arith.constant 1 : index
    %c1_27 = arith.constant 1 : index
    %c0_28 = arith.constant 0 : index
    %50 = vector.load %arg9[%c0_26, %c1, %c1_27, %c0_28] : memref<2x10x10x128xf32, #tpu.memory_space<vmem>>, vector<2x8x8x128xf32>
    tpu.vector_store %arg9[%c0_26, %c1, %c1_27, %c0_28], %49 {strides = array<i32>} : memref<2x10x10x128xf32, #tpu.memory_space<vmem>>, vector<2x8x8x128xf32>,
    %c0_29 = arith.constant 0 : index
    %c0_30 = arith.constant 0 : index
    %c0_31 = arith.constant 0 : index
    %51 = vector.load %arg4[%c0_29, %c0_30, %c0_31] : memref<3x3x128xf32, #tpu.memory_space<vmem>>, vector<3x3x128xf32>
    %52 = vector.extract_strided_slice %51 {offsets = [0, 0, 0], sizes = [1, 1, 128], strides = [1, 1, 1]} : vector<3x3x128xf32> to vector<1x1x128xf32>
    %53 = vector.shape_cast %52 : vector<1x1x128xf32> to vector<128xf32>
    %54 = vector.extract_strided_slice %51 {offsets = [0, 1, 0], sizes = [1, 1, 128], strides = [1, 1, 1]} : vector<3x3x128xf32> to vector<1x1x128xf32>
    %55 = vector.shape_cast %54 : vector<1x1x128xf32> to vector<128xf32>
    %56 = vector.extract_strided_slice %51 {offsets = [0, 2, 0], sizes = [1, 1, 128], strides = [1, 1, 1]} : vector<3x3x128xf32> to vector<1x1x128xf32>
    %57 = vector.shape_cast %56 : vector<1x1x128xf32> to vector<128xf32>
    %58 = vector.extract_strided_slice %51 {offsets = [1, 0, 0], sizes = [1, 1, 128], strides = [1, 1, 1]} : vector<3x3x128xf32> to vector<1x1x128xf32>
    %59 = vector.shape_cast %58 : vector<1x1x128xf32> to vector<128xf32>
    %60 = vector.extract_strided_slice %51 {offsets = [1, 1, 0], sizes = [1, 1, 128], strides = [1, 1, 1]} : vector<3x3x128xf32> to vector<1x1x128xf32>
    %61 = vector.shape_cast %60 : vector<1x1x128xf32> to vector<128xf32>
    %62 = vector.extract_strided_slice %51 {offsets = [1, 2, 0], sizes = [1, 1, 128], strides = [1, 1, 1]} : vector<3x3x128xf32> to vector<1x1x128xf32>
    %63 = vector.shape_cast %62 : vector<1x1x128xf32> to vector<128xf32>
    %64 = vector.extract_strided_slice %51 {offsets = [2, 0, 0], sizes = [1, 1, 128], strides = [1, 1, 1]} : vector<3x3x128xf32> to vector<1x1x128xf32>
    %65 = vector.shape_cast %64 : vector<1x1x128xf32> to vector<128xf32>
    %66 = vector.extract_strided_slice %51 {offsets = [2, 1, 0], sizes = [1, 1, 128], strides = [1, 1, 1]} : vector<3x3x128xf32> to vector<1x1x128xf32>
    %67 = vector.shape_cast %66 : vector<1x1x128xf32> to vector<128xf32>
    %68 = vector.extract_strided_slice %51 {offsets = [2, 2, 0], sizes = [1, 1, 128], strides = [1, 1, 1]} : vector<3x3x128xf32> to vector<1x1x128xf32>
    %69 = vector.shape_cast %68 : vector<1x1x128xf32> to vector<128xf32>
    %c0_32 = arith.constant 0 : index
    %c0_33 = arith.constant 0 : index
    %c0_34 = arith.constant 0 : index
    %c0_35 = arith.constant 0 : index
    %70 = vector.load %arg9[%c0_32, %c0_33, %c0_34, %c0_35] : memref<2x10x10x128xf32, #tpu.memory_space<vmem>>, vector<2x8x8x128xf32>
    %71 = vector.shape_cast %53 : vector<128xf32> to vector<1x1x1x128xf32>
    %72 = vector.broadcast %71 : vector<1x1x1x128xf32> to vector<2x8x8x128xf32>
    %73 = arith.mulf %70, %72 : vector<2x8x8x128xf32>
    %c0_36 = arith.constant 0 : index
    %c0_37 = arith.constant 0 : index
    %c1_38 = arith.constant 1 : index
    %c0_39 = arith.constant 0 : index
    %74 = vector.load %arg9[%c0_36, %c0_37, %c1_38, %c0_39] : memref<2x10x10x128xf32, #tpu.memory_space<vmem>>, vector<2x8x8x128xf32>
    %75 = vector.shape_cast %55 : vector<128xf32> to vector<1x1x1x128xf32>
    %76 = vector.broadcast %75 : vector<1x1x1x128xf32> to vector<2x8x8x128xf32>
    %77 = arith.mulf %74, %76 : vector<2x8x8x128xf32>
    %78 = arith.addf %73, %77 : vector<2x8x8x128xf32>
    %c0_40 = arith.constant 0 : index
    %c0_41 = arith.constant 0 : index
    %c2 = arith.constant 2 : index
    %c0_42 = arith.constant 0 : index
    %79 = vector.load %arg9[%c0_40, %c0_41, %c2, %c0_42] : memref<2x10x10x128xf32, #tpu.memory_space<vmem>>, vector<2x8x8x128xf32>
    %80 = vector.shape_cast %57 : vector<128xf32> to vector<1x1x1x128xf32>
    %81 = vector.broadcast %80 : vector<1x1x1x128xf32> to vector<2x8x8x128xf32>
    %82 = arith.mulf %79, %81 : vector<2x8x8x128xf32>
    %83 = arith.addf %78, %82 : vector<2x8x8x128xf32>
    %c0_43 = arith.constant 0 : index
    %c1_44 = arith.constant 1 : index
    %c0_45 = arith.constant 0 : index
    %c0_46 = arith.constant 0 : index
    %84 = vector.load %arg9[%c0_43, %c1_44, %c0_45, %c0_46] : memref<2x10x10x128xf32, #tpu.memory_space<vmem>>, vector<2x8x8x128xf32>
    %85 = vector.shape_cast %59 : vector<128xf32> to vector<1x1x1x128xf32>
    %86 = vector.broadcast %85 : vector<1x1x1x128xf32> to vector<2x8x8x128xf32>
    %87 = arith.mulf %84, %86 : vector<2x8x8x128xf32>
    %c0_47 = arith.constant 0 : index
    %c1_48 = arith.constant 1 : index
    %c1_49 = arith.constant 1 : index
    %c0_50 = arith.constant 0 : index
    %88 = vector.load %arg9[%c0_47, %c1_48, %c1_49, %c0_50] : memref<2x10x10x128xf32, #tpu.memory_space<vmem>>, vector<2x8x8x128xf32>
    %89 = vector.shape_cast %61 : vector<128xf32> to vector<1x1x1x128xf32>
    %90 = vector.broadcast %89 : vector<1x1x1x128xf32> to vector<2x8x8x128xf32>
    %91 = arith.mulf %88, %90 : vector<2x8x8x128xf32>
    %92 = arith.addf %87, %91 : vector<2x8x8x128xf32>
    %c0_51 = arith.constant 0 : index
    %c1_52 = arith.constant 1 : index
    %c2_53 = arith.constant 2 : index
    %c0_54 = arith.constant 0 : index
    %93 = vector.load %arg9[%c0_51, %c1_52, %c2_53, %c0_54] : memref<2x10x10x128xf32, #tpu.memory_space<vmem>>, vector<2x8x8x128xf32>
    %94 = vector.shape_cast %63 : vector<128xf32> to vector<1x1x1x128xf32>
    %95 = vector.broadcast %94 : vector<1x1x1x128xf32> to vector<2x8x8x128xf32>
    %96 = arith.mulf %93, %95 : vector<2x8x8x128xf32>
    %97 = arith.addf %92, %96 : vector<2x8x8x128xf32>
    %c0_55 = arith.constant 0 : index
    %c2_56 = arith.constant 2 : index
    %c0_57 = arith.constant 0 : index
    %c0_58 = arith.constant 0 : index
    %98 = vector.load %arg9[%c0_55, %c2_56, %c0_57, %c0_58] : memref<2x10x10x128xf32, #tpu.memory_space<vmem>>, vector<2x8x8x128xf32>
    %99 = vector.shape_cast %65 : vector<128xf32> to vector<1x1x1x128xf32>
    %100 = vector.broadcast %99 : vector<1x1x1x128xf32> to vector<2x8x8x128xf32>
    %101 = arith.mulf %98, %100 : vector<2x8x8x128xf32>
    %c0_59 = arith.constant 0 : index
    %c2_60 = arith.constant 2 : index
    %c1_61 = arith.constant 1 : index
    %c0_62 = arith.constant 0 : index
    %102 = vector.load %arg9[%c0_59, %c2_60, %c1_61, %c0_62] : memref<2x10x10x128xf32, #tpu.memory_space<vmem>>, vector<2x8x8x128xf32>
    %103 = vector.shape_cast %67 : vector<128xf32> to vector<1x1x1x128xf32>
    %104 = vector.broadcast %103 : vector<1x1x1x128xf32> to vector<2x8x8x128xf32>
    %105 = arith.mulf %102, %104 : vector<2x8x8x128xf32>
    %106 = arith.addf %101, %105 : vector<2x8x8x128xf32>
    %c0_63 = arith.constant 0 : index
    %c2_64 = arith.constant 2 : index
    %c2_65 = arith.constant 2 : index
    %c0_66 = arith.constant 0 : index
    %107 = vector.load %arg9[%c0_63, %c2_64, %c2_65, %c0_66] : memref<2x10x10x128xf32, #tpu.memory_space<vmem>>, vector<2x8x8x128xf32>
    %108 = vector.shape_cast %69 : vector<128xf32> to vector<1x1x1x128xf32>
    %109 = vector.broadcast %108 : vector<1x1x1x128xf32> to vector<2x8x8x128xf32>
    %110 = arith.mulf %107, %109 : vector<2x8x8x128xf32>
    %111 = arith.addf %106, %110 : vector<2x8x8x128xf32>
    %112 = arith.addf %83, %97 : vector<2x8x8x128xf32>
    %c0_67 = arith.constant 0 : index
    %c0_68 = arith.constant 0 : index
    %113 = vector.load %arg5[%c0_67, %c0_68] : memref<1x128xf32, #tpu.memory_space<vmem>>, vector<1x128xf32>
    %114 = vector.shape_cast %113 : vector<1x128xf32> to vector<128xf32>
    %115 = vector.shape_cast %114 : vector<128xf32> to vector<1x1x1x128xf32>
    %116 = vector.broadcast %115 : vector<1x1x1x128xf32> to vector<2x8x8x128xf32>
    %117 = arith.addf %111, %116 : vector<2x8x8x128xf32>
    %118 = arith.addf %112, %117 : vector<2x8x8x128xf32>
    %cst_69 = arith.constant 0.707106769 : f32
    %119 = vector.broadcast %cst_69 : f32 to vector<2x8x8x128xf32>
    %120 = arith.mulf %118, %119 : vector<2x8x8x128xf32>
    %cst_70 = arith.constant 0.000000e+00 : f32
    %121 = vector.broadcast %cst_70 : f32 to vector<2x8x8x128xf32>
    %122 = arith.cmpf oge, %120, %121 : vector<2x8x8x128xf32>
    %cst_71 = arith.constant 1.000000e+00 : f32
    %cst_72 = arith.constant -1.000000e+00 : f32
    %123 = vector.broadcast %cst_71 : f32 to vector<2x8x8x128xf32>
    %124 = vector.broadcast %cst_72 : f32 to vector<2x8x8x128xf32>
    %125 = arith.select %122, %123, %124 : vector<2x8x8x128xi1>, vector<2x8x8x128xf32>
    %126 = math.absf %120 : vector<2x8x8x128xf32>
    %cst_73 = arith.constant 0.327591091 : f32
    %127 = vector.broadcast %cst_73 : f32 to vector<2x8x8x128xf32>
    %128 = arith.mulf %127, %126 : vector<2x8x8x128xf32>
    %cst_74 = arith.constant 1.000000e+00 : f32
    %129 = vector.broadcast %cst_74 : f32 to vector<2x8x8x128xf32>
    %130 = arith.addf %129, %128 : vector<2x8x8x128xf32>
    %131 = tpu.reciprocal %130 {approx = true} : vector<2x8x8x128xf32> -> vector<2x8x8x128xf32>
    %cst_75 = arith.constant 1.06140542 : f32
    %132 = vector.broadcast %cst_75 : f32 to vector<2x8x8x128xf32>
    %133 = arith.mulf %132, %131 : vector<2x8x8x128xf32>
    %cst_76 = arith.constant -1.45315206 : f32
    %134 = vector.broadcast %cst_76 : f32 to vector<2x8x8x128xf32>
    %135 = arith.addf %133, %134 : vector<2x8x8x128xf32>
    %136 = arith.mulf %135, %131 : vector<2x8x8x128xf32>
    %cst_77 = arith.constant 1.42141378 : f32
    %137 = vector.broadcast %cst_77 : f32 to vector<2x8x8x128xf32>
    %138 = arith.addf %136, %137 : vector<2x8x8x128xf32>
    %139 = arith.mulf %138, %131 : vector<2x8x8x128xf32>
    %cst_78 = arith.constant -0.284496725 : f32
    %140 = vector.broadcast %cst_78 : f32 to vector<2x8x8x128xf32>
    %141 = arith.addf %139, %140 : vector<2x8x8x128xf32>
    %142 = arith.mulf %141, %131 : vector<2x8x8x128xf32>
    %cst_79 = arith.constant 0.254829586 : f32
    %143 = vector.broadcast %cst_79 : f32 to vector<2x8x8x128xf32>
    %144 = arith.addf %142, %143 : vector<2x8x8x128xf32>
    %145 = arith.mulf %144, %131 : vector<2x8x8x128xf32>
    %cst_80 = arith.constant 0.000000e+00 : f32
    %146 = vector.broadcast %cst_80 : f32 to vector<2x8x8x128xf32>
    %147 = arith.subf %146, %126 : vector<2x8x8x128xf32>
    %148 = arith.mulf %147, %126 : vector<2x8x8x128xf32>
    %149 = math.exp %148 : vector<2x8x8x128xf32>
    %150 = arith.mulf %145, %149 : vector<2x8x8x128xf32>
    %cst_81 = arith.constant 1.000000e+00 : f32
    %151 = vector.broadcast %cst_81 : f32 to vector<2x8x8x128xf32>
    %152 = arith.subf %151, %150 : vector<2x8x8x128xf32>
    %153 = arith.mulf %125, %152 : vector<2x8x8x128xf32>
    %cst_82 = arith.constant 5.000000e-01 : f32
    %154 = vector.broadcast %cst_82 : f32 to vector<2x8x8x128xf32>
    %155 = arith.mulf %154, %118 : vector<2x8x8x128xf32>
    %cst_83 = arith.constant 1.000000e+00 : f32
    %156 = vector.broadcast %cst_83 : f32 to vector<2x8x8x128xf32>
    %157 = arith.addf %156, %153 : vector<2x8x8x128xf32>
    %158 = arith.mulf %155, %157 : vector<2x8x8x128xf32>
    %159 = vector.shape_cast %158 : vector<2x8x8x128xf32> to vector<128x128xf32>
    %c0_84 = arith.constant 0 : index
    %c0_85 = arith.constant 0 : index
    %160 = vector.load %arg6[%c0_84, %c0_85] : memref<128x128xf32, #tpu.memory_space<vmem>>, vector<128x128xf32>
    %cst_86 = arith.constant dense<0.000000e+00> : vector<128x128xf32>
    %161 = tpu.matmul %159, %160, %cst_86 {dimension_numbers = #tpu.dot_dimension_numbers<[1], [0], [0], [1], [0, 0, 1, 1], [], []>} : vector<128x128xf32>, vector<128x128xf32>, vector<128x128xf32> -> vector<128x128xf32>
    %c0_87 = arith.constant 0 : index
    %c0_88 = arith.constant 0 : index
    %162 = vector.load %arg7[%c0_87, %c0_88] : memref<1x128xf32, #tpu.memory_space<vmem>>, vector<1x128xf32>
    %163 = vector.broadcast %162 : vector<1x128xf32> to vector<128x128xf32>
    %164 = arith.addf %161, %163 : vector<128x128xf32>
    %165 = vector.shape_cast %164 : vector<128x128xf32> to vector<2x64x128xf32>
    %c0_89 = arith.constant 0 : index
    %c0_90 = arith.constant 0 : index
    %c0_91 = arith.constant 0 : index
    %166 = vector.load %arg8[%c0_89, %c0_90, %c0_91] : memref<2x64x128xf32, #tpu.memory_space<vmem>>, vector<2x64x128xf32>
    tpu.vector_store %arg8[%c0_89, %c0_90, %c0_91], %165 {strides = array<i32>} : memref<2x64x128xf32, #tpu.memory_space<vmem>>, vector<2x64x128xf32>,
    return
  }
  func.func @transform_0(%arg0: i32) -> (i32, i32, i32) {
    %c0_i32 = arith.constant 0 : i32
    %c0_i32_0 = arith.constant 0 : i32
    %c0_i32_1 = arith.constant 0 : i32
    return %arg0, %c0_i32, %c0_i32_0 : i32, i32, i32
  }
  func.func @transform_1(%arg0: i32) -> (i32, i32) {
    %c0_i32 = arith.constant 0 : i32
    %c0_i32_0 = arith.constant 0 : i32
    %c0_i32_1 = arith.constant 0 : i32
    return %c0_i32, %c0_i32_0 : i32, i32
  }
  func.func @transform_2(%arg0: i32) -> (i32, i32) {
    %c0_i32 = arith.constant 0 : i32
    %c0_i32_0 = arith.constant 0 : i32
    %c0_i32_1 = arith.constant 0 : i32
    return %c0_i32, %c0_i32_0 : i32, i32
  }
  func.func @transform_3(%arg0: i32) -> (i32, i32, i32) {
    %c0_i32 = arith.constant 0 : i32
    %c0_i32_0 = arith.constant 0 : i32
    %c0_i32_1 = arith.constant 0 : i32
    %c0_i32_2 = arith.constant 0 : i32
    return %c0_i32, %c0_i32_0, %c0_i32_1 : i32, i32, i32
  }
  func.func @transform_4(%arg0: i32) -> (i32, i32) {
    %c0_i32 = arith.constant 0 : i32
    %c0_i32_0 = arith.constant 0 : i32
    %c0_i32_1 = arith.constant 0 : i32
    return %c0_i32, %c0_i32_0 : i32, i32
  }
  func.func @transform_5(%arg0: i32) -> (i32, i32) {
    %c0_i32 = arith.constant 0 : i32
    %c0_i32_0 = arith.constant 0 : i32
    %c0_i32_1 = arith.constant 0 : i32
    return %c0_i32, %c0_i32_0 : i32, i32
  }
  func.func @transform_6(%arg0: i32) -> (i32, i32) {
    %c0_i32 = arith.constant 0 : i32
    %c0_i32_0 = arith.constant 0 : i32
    %c0_i32_1 = arith.constant 0 : i32
    return %c0_i32, %c0_i32_0 : i32, i32
  }
  func.func @transform_7(%arg0: i32) -> (i32, i32, i32) {
    %c0_i32 = arith.constant 0 : i32
    %c0_i32_0 = arith.constant 0 : i32
    %c0_i32_1 = arith.constant 0 : i32
    return %arg0, %c0_i32, %c0_i32_0 : i32, i32, i32
  }
}

</mosaic_0001>

<bundles_post_ra>
// kernel: tpu_custom_call.1
= control target key start
LH: loop header
LB: loop body
LE: loop exit
PB: predicated region body
PF: predicated region fallthrough
CT: control target
= control target key end

     0   :  { %vm52_vm0 = vcmask 130048   ;;  %s3331_s0 = inlined_call_operand.vmem [shape: f32[2,64,16], index: 0, kind: input, shape index: {}]   ;;  %s3332_s1 = inlined_call_operand.vmem [shape: f32[16,128], index: 1, kind: input, shape index: {}]   ;;  %s3333_s2 = inlined_call_operand.vmem [shape: f32[1,128], index: 2, kind: input, shape index: {}]   ;;  %s3334_s3 = inlined_call_operand.vmem [shape: f32[3,3,128], index: 3, kind: input, shape index: {}]   ;;  %s3335_s4 = inlined_call_operand.vmem [shape: f32[1,128], index: 4, kind: input, shape index: {}]   ;;  %s3336_s5 = inlined_call_operand.vmem [shape: f32[128,128], index: 5, kind: input, shape index: {}]   ;;  %s3337_s6 = inlined_call_operand.vmem [shape: f32[1,128], index: 6, kind: input, shape index: {}]   ;;  %s3338_s7 = inlined_call_operand.hbm [shape: f32[2,64,128], index: 7, kind: output, shape index: {}]  }
   0x1   :  { %v44_v0 = vld [vmem:[%s3332_s1 + $0x8] sm:$0xff]  ;;  %v43_v1 = vld [vmem:[%s3332_s1] sm:$0xff]  ;;  %v29_v4 = vld [vmem:[%s3331_s0 + $0x10] sm:$0xff] }
   0x2   :  { %v27_v2 = vld [vmem:[%s3331_s0] sm:$0xff]  ;;  %1883 = vmatprep.subr.mxu0 %v44_v0  ;;  %v28_v3 = vld [vmem:[%s3331_s0 + $0x8] sm:$0xff]  ;;  %v30_v5 = vld [vmem:[%s3331_s0 + $0x18] sm:$0xff] }
   0x3   :  { %1887 = vmatprep.mubr.msk.f32.mxu0 %vm52_vm0, %v27_v2  ;;  %1884 = vmatpush3.msra.mxu0 %v44_v0 }
   0x4   :  { %1885 = vmatprep.subr.mxu0 %v43_v1 }
   0x5   :  { %1886 = vmatpush3.msra.mxu0 %v43_v1 }
   0x6   :  { %1888 = vmatmul.mubr.msk.f32.vlgmr.msra.gmra.mxu0 %vm52_vm0, %v28_v3 }
   0x7   :  { %1890 = vmatprep.mubr.msk.f32.mxu0 %vm52_vm0, %v29_v4 }
   0x8   :  { %12 = vsyncpa [#allocation4], 0  ;;  %v31_v6 = vld [vmem:[%s3331_s0 + $0x20] sm:$0xff]  ;;  %v32_v7 = vld [vmem:[%s3331_s0 + $0x28] sm:$0xff]  ;;  %v2156_v18 = vmov 0.0   ;;  %v738_v19 = vlaneseq }
   0x9   :  { %v33_v8 = vld [vmem:[%s3331_s0 + $0x30] sm:$0xff]  ;;  %v34_v9 = vld [vmem:[%s3331_s0 + $0x38] sm:$0xff]  ;;  %v35_v10 = vld [vmem:[%s3331_s0 + $0x40] sm:$0xff]  ;;  %666 = vst [vmem:[#allocation2 + $0x20] sm:$0xff] %v2156_v18 }
   0xa   :  { %1891 = vmatmul.mubr.msk.f32.gmra.mxu0 %vm52_vm0, %v30_v5  ;;  %v36_v11 = vld [vmem:[%s3331_s0 + $0x48] sm:$0xff]  ;;  %v37_v12 = vld [vmem:[%s3331_s0 + $0x50] sm:$0xff]  ;;  %v38_v13 = vld [vmem:[%s3331_s0 + $0x58] sm:$0xff]  ;;  %667 = vst [vmem:[#allocation2 + $0x28] sm:$0x3] %v2156_v18  ;;  %v739_v20 = vshrl.u32 %v738_v19, 7 }
   0xb   :  { %1893 = vmatprep.mubr.msk.f32.mxu0 %vm52_vm0, %v31_v6  ;;  %v39_v14 = vld [vmem:[%s3331_s0 + $0x60] sm:$0xff]  ;;  %v40_v15 = vld [vmem:[%s3331_s0 + $0x68] sm:$0xff]  ;;  %v41_v16 = vld [vmem:[%s3331_s0 + $0x70] sm:$0xff]  ;;  %662 = vst [vmem:[#allocation2] sm:$0xff] %v2156_v18 }
   0xc   :  { %v42_v17 = vld [vmem:[%s3331_s0 + $0x78] sm:$0xff]  ;;  %663 = vst [vmem:[#allocation2 + $0x8] sm:$0x3] %v2156_v18  ;;  %664 = vst [vmem:[#allocation2 + $0x10] sm:$0xff] %v2156_v18  ;;  %v740_v21 = vsub.s32 0, %v739_v20  ;;  %v776_v24 = vsub.s32 1, %v739_v20 }
   0xd   :  { %665 = vst [vmem:[#allocation2 + $0x18] sm:$0x3] %v2156_v18  ;;  %668 = vst [vmem:[#allocation2 + $0x30] sm:$0xff] %v2156_v18  ;;  %v719_v22 = vld [vmem:[%s3334_s3] sm:$0x7]  ;;  %v828_v30 = vsub.s32 2, %v739_v20 }
   0xe   :  { %1894 = vmatmul.mubr.msk.f32.gmra.mxu0 %vm52_vm0, %v32_v7  ;;  %669 = vst [vmem:[#allocation2 + $0x38] sm:$0x3] %v2156_v18  ;;  %670 = vst [vmem:[#allocation2 + $0x40] sm:$0xff] %v2156_v18  ;;  %v2277_v23 = vld [vmem:[%s3333_s2] ss:$0 sm:$0xff]  ;;  %v2279_v27 = vrot.slane %v719_v22, %v740_v21  ;;  %v2281_v28 = vrot.slane %v719_v22, %v776_v24  ;;  %v1629_v46 = vld [vmem:[%s3336_s5 + $0x78] sm:$0xff] }
   0xf   :  { %1896 = vmatprep.mubr.msk.f32.mxu0 %vm52_vm0, %v33_v8  ;;  %671 = vst [vmem:[#allocation2 + $0x48] sm:$0x3] %v2156_v18  ;;  %672 = vst [vmem:[#allocation2 + $0x50] sm:$0xff] %v2156_v18  ;;  %v720_v32 = vld [vmem:[%s3334_s3 + $0x4] sm:$0x7]  ;;  %v2295_v42 = vrot.slane %v719_v22, %v828_v30  ;;  %v1628_v47 = vld [vmem:[%s3336_s5 + $0x70] sm:$0xff]  ;;  %1911 = vmatprep.subr.mxu0 %v1629_v46 }
  0x10   :  { %673 = vst [vmem:[#allocation2 + $0x58] sm:$0x3] %v2156_v18  ;;  %674 = vst [vmem:[#allocation2 + $0x60] sm:$0xff] %v2156_v18  ;;  %v2288_v33 = vmul.f32 0.0, %v2279_v27  ;;  %v721_v37 = vld [vmem:[%s3334_s3 + $0x8] sm:$0x7]  ;;  %v2297_v43 = vrot.slane %v720_v32, %v776_v24  ;;  %v2309_v49 = vrot.slane %v720_v32, %v740_v21  ;;  %1967 = vmatprep.subr.mxu1 %v1629_v46  ;;  %1912 = vmatpush3.msra.mxu0 %v1629_v46 }
  0x11   :  { %675 = vst [vmem:[#allocation2 + $0x68] sm:$0x3] %v2156_v18  ;;  %676 = vst [vmem:[#allocation2 + $0x70] sm:$0xff] %v2156_v18  ;;  %v2311_v50 = vrot.slane %v721_v37, %v776_v24  ;;  %v1627_v58 = vld [vmem:[%s3336_s5 + $0x68] sm:$0xff]  ;;  %1983 = vmatpush3.msra.mxu1 %v1629_v46  ;;  %v2323_v59 = vrot.slane %v720_v32, %v828_v30  ;;  %v2325_v60 = vrot.slane %v721_v37, %v740_v21  ;;  %v1626_v4 = vld [vmem:[%s3336_s5 + $0x60] sm:$0xff] }
  0x12   :  { %1897 = vmatmul.mubr.msk.f32.gmra.mxu0 %vm52_vm0, %v34_v9  ;;  %677 = vst [vmem:[#allocation2 + $0x78] sm:$0x3] %v2156_v18  ;;  %678 = vst [vmem:[#allocation2 + $0x80] sm:$0xff] %v2156_v18  ;;  %1913 = vmatprep.subr.mxu0 %v1628_v47  ;;  %v2336_v7 = vrot.slane %v721_v37, %v828_v30  ;;  %v1624_v22 = vld [vmem:[%s3336_s5 + $0x50] sm:$0xff]  ;;  %v1623_v32 = vld [vmem:[%s3336_s5 + $0x48] sm:$0xff] }
  0x13   :  { %1899 = vmatprep.mubr.msk.f32.mxu0 %vm52_vm0, %v35_v10  ;;  %679 = vst [vmem:[#allocation2 + $0x88] sm:$0x3] %v2156_v18  ;;  %680 = vst [vmem:[#allocation2 + $0x90] sm:$0xff] %v2156_v18  ;;  %v758_v25 = vld [vmem:[#allocation2 + $0x1] sm:$0xff]  ;;  %1968 = vmatprep.subr.mxu1 %v1628_v47 }
  0x14   :  { %681 = vst [vmem:[#allocation2 + $0x98] sm:$0x3] %v2156_v18  ;;  %682 = vst [vmem:[#allocation2 + $0xa0] sm:$0xff] %v2156_v18  ;;  %v778_v34 = vmul.f32 %v2281_v28, %v758_v25  ;;  %v810_v39 = vld [vmem:[#allocation2 + $0x2] sm:$0xff]  ;;  %1914 = vmatpush3.msra.mxu0 %v1628_v47  ;;  %1984 = vmatpush3.msra.mxu1 %v1628_v47 }
  0x15   :  { %683 = vst [vmem:[#allocation2 + $0xa8] sm:$0x3] %v2156_v18  ;;  %684 = vst [vmem:[#allocation2 + $0xb0] sm:$0xff] %v2156_v18  ;;  %v830_v54 = vmul.f32 %v2295_v42, %v810_v39  ;;  %1915 = vmatprep.subr.mxu0 %v1627_v58  ;;  %1969 = vmatprep.subr.mxu1 %v1627_v58 }
  0x16   :  { %1900 = vmatmul.mubr.msk.f32.gmra.mxu0 %vm52_vm0, %v36_v11  ;;  %685 = vst [vmem:[#allocation2 + $0xb8] sm:$0x3] %v2156_v18  ;;  %686 = vst [vmem:[#allocation2 + $0xc0] sm:$0xff] %v2156_v18  ;;  %v794_v48 = vadd.f32 %v778_v34, %v2288_v33  ;;  %1985 = vmatpush3.msra.mxu1 %v1627_v58 }
  0x17   :  { %1902 = vmatprep.mubr.msk.f32.mxu0 %vm52_vm0, %v37_v12  ;;  %687 = vst [vmem:[#allocation2 + $0xc8] sm:$0x3] %v2156_v18  ;;  %688 = vst [vmem:[#allocation2 + $0xd0] sm:$0xff] %v2156_v18  ;;  %1916 = vmatpush3.msra.mxu0 %v1627_v58  ;;  %v1625_v12 = vld [vmem:[%s3336_s5 + $0x58] sm:$0xff] }
  0x18   :  { %689 = vst [vmem:[#allocation2 + $0xd8] sm:$0x3] %v2156_v18  ;;  %690 = vst [vmem:[#allocation2 + $0xe0] sm:$0xff] %v2156_v18  ;;  %v2334_v6 = vadd.f32 %v830_v54, %v794_v48  ;;  %1917 = vmatprep.subr.mxu0 %v1626_v4  ;;  %1970 = vmatprep.subr.mxu1 %v1626_v4 }
  0x19   :  { %691 = vst [vmem:[#allocation2 + $0xe8] sm:$0x3] %v2156_v18  ;;  %692 = vst [vmem:[#allocation2 + $0xf0] sm:$0xff] %v2156_v18  ;;  %1918 = vmatpush3.msra.mxu0 %v1626_v4  ;;  %1986 = vmatpush3.msra.mxu1 %v1626_v4 }
  0x1a   :  { %1903 = vmatmul.mubr.msk.f32.gmra.mxu0 %vm52_vm0, %v38_v13  ;;  %693 = vst [vmem:[#allocation2 + $0xf8] sm:$0x3] %v2156_v18  ;;  %694 = vst [vmem:[#allocation2 + $0x100] sm:$0xff] %v2156_v18  ;;  %v3339_v13 = vmov -1.0   ;;  %1919 = vmatprep.subr.mxu0 %v1625_v12 }
  0x1b   :  { %1905 = vmatprep.mubr.msk.f32.mxu0 %vm52_vm0, %v39_v14  ;;  %695 = vst [vmem:[#allocation2 + $0x108] sm:$0x3] %v2156_v18  ;;  %696 = vst [vmem:[#allocation2 + $0x110] sm:$0xff] %v2156_v18  ;;  %1971 = vmatprep.subr.mxu1 %v1625_v12 }
  0x1c   :  { %697 = vst [vmem:[#allocation2 + $0x118] sm:$0x3] %v2156_v18  ;;  %698 = vst [vmem:[#allocation2 + $0x120] sm:$0xff] %v2156_v18  ;;  %1920 = vmatpush3.msra.mxu0 %v1625_v12  ;;  %1987 = vmatpush3.msra.mxu1 %v1625_v12 }
  0x1d   :  { %699 = vst [vmem:[#allocation2 + $0x128] sm:$0x3] %v2156_v18  ;;  %700 = vst [vmem:[#allocation2 + $0x130] sm:$0xff] %v2156_v18  ;;  %1921 = vmatprep.subr.mxu0 %v1624_v22  ;;  %1972 = vmatprep.subr.mxu1 %v1624_v22 }
  0x1e   :  { %1906 = vmatmul.mubr.msk.f32.gmra.mxu0 %vm52_vm0, %v40_v15  ;;  %701 = vst [vmem:[#allocation2 + $0x138] sm:$0x3] %v2156_v18  ;;  %1988 = vmatpush3.msra.mxu1 %v1624_v22 }
  0x1f   :  { %1908 = vmatprep.mubr.msk.f32.mxu0 %vm52_vm0, %v41_v16  ;;  %1922 = vmatpush3.msra.mxu0 %v1624_v22 }
  0x20   :  { %1923 = vmatprep.subr.mxu0 %v1623_v32  ;;  %1973 = vmatprep.subr.mxu1 %v1623_v32 }
  0x21   :  { %1924 = vmatpush3.msra.mxu0 %v1623_v32  ;;  %1989 = vmatpush3.msra.mxu1 %v1623_v32 }
  0x22   :  { %1909 = vmatmul.mubr.msk.f32.gmra.mxu0 %vm52_vm0, %v42_v17 }
  0xc6   :  { %v1889_v26 = vpop.f32.mrf.mxu0 }
  0xc7   :  { %v173_v29 = vadd.f32 %v1889_v26, %v2277_v23 }
  0xc8   :  { %v167_v31 = vpop.f32.mrf.mxu0 }
  0xc9   :  { %v247_v35 = vmul.f32 0.70710677, %v173_v29  ;;  %v168_v36 = vadd.f32 %v2277_v23, %v167_v31  ;;  %v2338_v8 = vmul.f32 0.5, %v173_v29 }
  0xca   :  { %v1892_v38 = vpop.f32.mrf.mxu0 }
  0xcb   :  { %v295_v40 = vand.u32 2147483647, %v247_v35  ;;  %v246_v41 = vmul.f32 0.70710677, %v168_v36  ;;  %v2300_v44 = vadd.f32 %v1892_v38, %v2277_v23  ;;  %vm263_vm1 = vcmp.ge.f32.partialorder %v247_v35, 0.0 }
  0xcc   :  { %v177_v45 = vpop.f32.mrf.mxu0  ;;  %v2345_v14 = vsel %vm263_vm1, 1.0, %v3339_v13  ;;  %v2351_v16 = vmul.f32 0.5, %v168_v36 }
  0xcd   :  { %v311_v51 = vmul.f32 0.3275911, %v295_v40  ;;  %v503_v52 = vsub.f32 0.0, %v295_v40  ;;  %v294_v53 = vand.u32 2147483647, %v246_v41  ;;  %v2318_v56 = vadd.f32 %v2277_v23, %v177_v45 }
  0xce   :  { %v2315_v55 = vmul.f32 0.70710677, %v2300_v44  ;;  %v1895_v57 = vpop.f32.mrf.mxu0  ;;  %vm262_vm2 = vcmp.ge.f32.partialorder %v246_v41, 0.0  ;;  %v2367_v34 = vmul.f32 0.5, %v2300_v44  ;;  %v1622_v41 = vld [vmem:[%s3336_s5 + $0x40] sm:$0xff] }
  0xcf   :  { %v327_v61 = vadd.f32 1.0, %v311_v51  ;;  %v310_v62 = vmul.f32 0.3275911, %v294_v53  ;;  %v502_v63 = vsub.f32 0.0, %v294_v53  ;;  %v519_v0 = vmul.f32 %v503_v52, %v295_v40  ;;  %v1621_v52 = vld [vmem:[%s3336_s5 + $0x38] sm:$0xff]  ;;  %1925 = vmatprep.subr.mxu0 %v1622_v41  ;;  %1974 = vmatprep.subr.mxu1 %v1622_v41 }
  0xd0   :  { %v297_v1 = vand.u32 2147483647, %v2315_v55  ;;  %v2329_v2 = vmul.f32 0.70710677, %v2318_v56  ;;  %v187_v3 = vpop.f32.mrf.mxu0  ;;  %v2349_v15 = vsel %vm262_vm2, 1.0, %v3339_v13  ;;  %v2355_v20 = vadd.f32 %v1895_v57, %v2277_v23  ;;  %1926 = vmatpush3.msra.mxu0 %v1622_v41  ;;  %1990 = vmatpush3.msra.mxu1 %v1622_v41 }
  0xd1   :  { %2004 = vrcp.f32 %v327_v61  ;;  %v326_v5 = vadd.f32 1.0, %v310_v62  ;;  %v518_v9 = vmul.f32 %v502_v63, %v294_v53  ;;  %v536_v18 = vmul.f32 1.442695, %v519_v0  ;;  %1927 = vmatprep.subr.mxu0 %v1621_v52  ;;  %1975 = vmatprep.subr.mxu1 %v1621_v52 }
  0xd2   :  { %v313_v10 = vmul.f32 0.3275911, %v297_v1  ;;  %v505_v11 = vsub.f32 0.0, %v297_v1  ;;  %v296_v17 = vand.u32 2147483647, %v2329_v2  ;;  %v1898_v21 = vpop.f32.mrf.mxu0  ;;  %v188_v29 = vadd.f32 %v2277_v23, %v187_v3  ;;  %1928 = vmatpush3.msra.mxu0 %v1621_v52  ;;  %1991 = vmatpush3.msra.mxu1 %v1621_v52 }
  0xd3   :  { %2006 = vrcp.f32 %v326_v5  ;;  %v534_v30 = vmul.f32 1.442695, %v518_v9  ;;  %vm265_vm3 = vcmp.ge.f32.partialorder %v2315_v55, 0.0  ;;  %v251_v31 = vmul.f32 0.70710677, %v2355_v20  ;;  %v1619_v5 = vld [vmem:[%s3336_s5 + $0x28] sm:$0xff] }
  0xd4   :  { %v329_v19 = vadd.f32 1.0, %v313_v10  ;;  %v521_v24 = vmul.f32 %v505_v11, %v297_v1  ;;  %v312_v25 = vmul.f32 0.3275911, %v296_v17  ;;  %v504_v26 = vsub.f32 0.0, %v296_v17  ;;  %v197_v40 = vpop.f32.mrf.mxu0 }
  0xd5   :  { %vm264_vm4 = vcmp.ge.f32.partialorder %v2329_v2, 0.0  ;;  %v250_v36 = vmul.f32 0.70710677, %v188_v29  ;;  %v299_v38 = vand.u32 2147483647, %v251_v31  ;;  %v2371_v39 = vadd.f32 %v1898_v21, %v2277_v23 }
  0xd6   :  { %2008 = vrcp.f32 %v329_v19  ;;  %v328_v35 = vadd.f32 1.0, %v312_v25  ;;  %v520_v37 = vmul.f32 %v504_v26, %v296_v17  ;;  %v2379_v44 = vsel %vm265_vm3, 1.0, %v3339_v13  ;;  %v1901_v26 = vpop.f32.mrf.mxu0 }
  0xd7   :  { %2010 = vpow2.f32 %v536_v18  ;;  %v540_v45 = vmul.f32 1.442695, %v521_v24  ;;  %v2382_v46 = vmul.f32 0.5, %v2318_v56  ;;  %v2387_v47 = vsel %vm264_vm4, 1.0, %v3339_v13  ;;  %v1620_v56 = vld [vmem:[%s3336_s5 + $0x30] sm:$0xff] }
  0xd8   :  { %2012 = vrcp.f32 %v328_v35  ;;  %v315_v48 = vmul.f32 0.3275911, %v299_v38  ;;  %v298_v51 = vand.u32 2147483647, %v250_v36  ;;  %vm267_vm5 = vcmp.ge.f32.partialorder %v251_v31, 0.0  ;;  %1929 = vmatprep.subr.mxu0 %v1620_v56  ;;  %1976 = vmatprep.subr.mxu1 %v1620_v56 }
  0xd9   :  { %2014 = vpow2.f32 %v534_v30  ;;  %v507_v53 = vsub.f32 0.0, %v299_v38  ;;  %v2393_v54 = vmul.f32 0.70710677, %v2371_v39  ;;  %v2396_v55 = vadd.f32 %v2277_v23, %v197_v40  ;;  %1930 = vmatpush3.msra.mxu0 %v1620_v56  ;;  %1992 = vmatpush3.msra.mxu1 %v1620_v56 }
  0xda   :  { %v538_v57 = vmul.f32 1.442695, %v520_v37  ;;  %v331_v58 = vadd.f32 1.0, %v315_v48  ;;  %v314_v61 = vmul.f32 0.3275911, %v298_v51  ;;  %v506_v62 = vsub.f32 0.0, %v298_v51  ;;  %1931 = vmatprep.subr.mxu0 %v1619_v5  ;;  %1977 = vmatprep.subr.mxu1 %v1619_v5 }
  0xdb   :  { %2016 = vpow2.f32 %v540_v45  ;;  %vm266_vm6 = vcmp.ge.f32.partialorder %v250_v36, 0.0  ;;  %v301_v63 = vand.u32 2147483647, %v2393_v54  ;;  %v2403_v0 = vmul.f32 0.70710677, %v2396_v55  ;;  %1932 = vmatpush3.msra.mxu0 %v1619_v5  ;;  %1993 = vmatpush3.msra.mxu1 %v1619_v5  ;;  %v1615_v5 = vld [vmem:[%s3336_s5 + $0x8] sm:$0xff] }
  0xdc   :  { %2018 = vrcp.f32 %v331_v58  ;;  %v2408_v2 = vmul.f32 0.5, %v2355_v20  ;;  %v330_v3 = vadd.f32 1.0, %v314_v61  ;;  %v2410_v4 = vmul.f32 0.5, %v188_v29  ;;  %v1618_v20 = vld [vmem:[%s3336_s5 + $0x20] sm:$0xff]  ;;  %v1617_v29 = vld [vmem:[%s3336_s5 + $0x18] sm:$0xff] }
  0xdd   :  { %v2418_v10 = vsel %vm267_vm5, 1.0, %v3339_v13  ;;  %v523_v11 = vmul.f32 %v507_v53, %v299_v38  ;;  %v317_v12 = vmul.f32 0.3275911, %v301_v63  ;;  %2020 = vpow2.f32 %v538_v57  ;;  %1933 = vmatprep.subr.mxu0 %v1618_v20  ;;  %1978 = vmatprep.subr.mxu1 %v1618_v20 }
  0xde   :  { %v2405_v1 = vpop.eup %2004  ;;  %v2422_v17 = vsel %vm266_vm6, 1.0, %v3339_v13  ;;  %v522_v18 = vmul.f32 %v506_v62, %v298_v51  ;;  %v300_v19 = vand.u32 2147483647, %v2403_v0  ;;  %2022 = vrcp.f32 %v330_v3  ;;  %1934 = vmatpush3.msra.mxu0 %v1618_v20  ;;  %1994 = vmatpush3.msra.mxu1 %v1618_v20 }
  0xdf   :  { %v359_v9 = vmul.f32 1.0614054, %v2405_v1  ;;  %v333_v24 = vadd.f32 1.0, %v317_v12  ;;  %v509_v25 = vsub.f32 0.0, %v301_v63  ;;  %vm269_vm7 = vcmp.ge.f32.partialorder %v2393_v54, 0.0  ;;  %1935 = vmatprep.subr.mxu0 %v1617_v29  ;;  %1979 = vmatprep.subr.mxu1 %v1617_v29 }
  0xe0   :  { %v2428_v21 = vpop.eup %2006  ;;  %v2436_v31 = vmul.f32 0.5, %v2371_v39  ;;  %v316_v32 = vmul.f32 0.3275911, %v300_v19  ;;  %v544_v37 = vmul.f32 1.442695, %v523_v11  ;;  %v508_v38 = vsub.f32 0.0, %v300_v19  ;;  %1936 = vmatpush3.msra.mxu0 %v1617_v29  ;;  %1995 = vmatpush3.msra.mxu1 %v1617_v29 }
  0xe1   :  { %v375_v22 = vadd.f32 -1.4531521, %v359_v9  ;;  %v358_v30 = vmul.f32 1.0614054, %v2428_v21  ;;  %2024 = vrcp.f32 %v333_v24  ;;  %v2443_v48 = vadd.f32 %v1901_v26, %v2277_v23  ;;  %v1616_v39 = vld [vmem:[%s3336_s5 + $0x10] sm:$0xff]  ;;  %v207_v24 = vpop.f32.mrf.mxu0 }
  0xe2   :  { %v332_v45 = vadd.f32 1.0, %v316_v32  ;;  %v542_v53 = vmul.f32 1.442695, %v522_v18  ;;  %v525_v56 = vmul.f32 %v509_v25, %v301_v63  ;;  %v2451_v57 = vmul.f32 0.5, %v2396_v55  ;;  %1937 = vmatprep.subr.mxu0 %v1616_v39  ;;  %1980 = vmatprep.subr.mxu1 %v1616_v39  ;;  %v1614_v25 = vld [vmem:[%s3336_s5] sm:$0xff] }
  0xe3   :  { %v2438_v35 = vpop.eup %2008  ;;  %v391_v36 = vmul.f32 %v2405_v1, %v375_v22  ;;  %v374_v40 = vadd.f32 -1.4531521, %v358_v30  ;;  %v2457_v3 = vmul.f32 0.70710677, %v2443_v48  ;;  %v2469_v11 = vsel %vm269_vm7, 1.0, %v3339_v13  ;;  %1938 = vmatpush3.msra.mxu0 %v1616_v39  ;;  %1996 = vmatpush3.msra.mxu1 %v1616_v39 }
  0xe4   :  { %v361_v41 = vmul.f32 1.0614054, %v2438_v35  ;;  %v2448_v51 = vpop.eup %2010  ;;  %2026 = vrcp.f32 %v332_v45  ;;  %v524_v12 = vmul.f32 %v508_v38, %v300_v19  ;;  %v548_v29 = vmul.f32 1.442695, %v525_v56  ;;  %1939 = vmatprep.subr.mxu0 %v1615_v5  ;;  %1981 = vmatprep.subr.mxu1 %v1615_v5 }
  0xe5   :  { %v407_v52 = vadd.f32 1.4214138, %v391_v36  ;;  %v2453_v58 = vpop.eup %2012  ;;  %v390_v61 = vmul.f32 %v2428_v21, %v374_v40  ;;  %2028 = vpow2.f32 %v544_v37  ;;  %v303_v22 = vand.u32 2147483647, %v2457_v3  ;;  %1940 = vmatpush3.msra.mxu0 %v1615_v5  ;;  %1997 = vmatpush3.msra.mxu1 %v1615_v5 }
  0xe6   :  { %v377_v62 = vadd.f32 -1.4531521, %v361_v41  ;;  %v2462_v63 = vpop.eup %2014  ;;  %v360_v9 = vmul.f32 1.0614054, %v2453_v58  ;;  %2030 = vpow2.f32 %v542_v53  ;;  %v546_v45 = vmul.f32 1.442695, %v524_v12  ;;  %1941 = vmatprep.subr.mxu0 %v1614_v25  ;;  %1982 = vmatprep.subr.mxu1 %v1614_v25 }
  0xe7   :  { %v423_v55 = vmul.f32 %v2405_v1, %v407_v52  ;;  %v406_v18 = vadd.f32 1.4214138, %v390_v61  ;;  %v319_v36 = vmul.f32 0.3275911, %v303_v22  ;;  %v511_v37 = vsub.f32 0.0, %v303_v22  ;;  %1942 = vmatpush3.msra.mxu0 %v1614_v25  ;;  %1998 = vmatpush3.msra.mxu1 %v1614_v25 }
  0xe8   :  { %v393_v20 = vmul.f32 %v2438_v35, %v377_v62  ;;  %v376_v54 = vadd.f32 -1.4531521, %v360_v9  ;;  %v2476_v19 = vpop.eup %2016  ;;  %v2484_v39 = vadd.f32 %v2277_v23, %v207_v24  ;;  %2032 = vpow2.f32 %v548_v29 }
  0xe9   :  { %v439_v26 = vadd.f32 -0.28449672, %v423_v55  ;;  %v422_v30 = vmul.f32 %v2428_v21, %v406_v18  ;;  %v2479_v38 = vpop.eup %2018  ;;  %v335_v61 = vadd.f32 1.0, %v319_v36  ;;  %v527_v9 = vmul.f32 %v511_v37, %v303_v22 }
  0xea   :  { %v409_v32 = vadd.f32 1.4214138, %v393_v20  ;;  %v392_v41 = vmul.f32 %v2453_v58, %v376_v54  ;;  %v363_v56 = vmul.f32 1.0614054, %v2479_v38  ;;  %v2021_v62 = vpop.eup %2020  ;;  %v2499_v36 = vmul.f32 0.70710677, %v2484_v39 }
  0xeb   :  { %v455_v40 = vmul.f32 %v2405_v1, %v439_v26  ;;  %v438_v52 = vadd.f32 -0.28449672, %v422_v30  ;;  %v2488_v18 = vpop.eup %2022  ;;  %2034 = vrcp.f32 %v335_v61  ;;  %vm268_vm8 = vcmp.ge.f32.partialorder %v2403_v0, 0.0 }
  0xec   :  { %v425_v53 = vmul.f32 %v2438_v35, %v409_v32  ;;  %v408_v55 = vadd.f32 1.4214138, %v392_v41  ;;  %v379_v24 = vadd.f32 -1.4531521, %v363_v56  ;;  %v362_v30 = vmul.f32 1.0614054, %v2488_v18 }
  0xed   :  { %v471_v5 = vadd.f32 0.2548296, %v455_v40  ;;  %v454_v12 = vmul.f32 %v2428_v21, %v438_v52  ;;  %2036 = vpow2.f32 %v546_v45  ;;  %v2504_v56 = vmul.f32 1.442695, %v527_v9 }
  0xee   :  { %v441_v20 = vadd.f32 -0.28449672, %v425_v53  ;;  %v424_v54 = vmul.f32 %v2453_v58, %v408_v55  ;;  %v2494_v25 = vpop.eup %2024  ;;  %v395_v22 = vmul.f32 %v2479_v38, %v379_v24  ;;  %v378_v41 = vadd.f32 -1.4531521, %v362_v30 }
  0xef   :  { %v487_v26 = vmul.f32 %v2405_v1, %v471_v5  ;;  %v470_v32 = vadd.f32 0.2548296, %v454_v12  ;;  %v365_v1 = vmul.f32 1.0614054, %v2494_v25  ;;  %2038 = vpow2.f32 %v2504_v56 }
  0xf0   :  { %v457_v29 = vmul.f32 %v2438_v35, %v441_v20  ;;  %v440_v40 = vadd.f32 -0.28449672, %v424_v54  ;;  %v411_v45 = vadd.f32 1.4214138, %v395_v22  ;;  %v394_v12 = vmul.f32 %v2488_v18, %v378_v41 }
  0xf1   :  { %v567_v37 = vmul.f32 %v2448_v51, %v487_v26  ;;  %v486_v52 = vmul.f32 %v2428_v21, %v470_v32  ;;  %v2506_v61 = vpop.eup %2026  ;;  %v381_v20 = vadd.f32 -1.4531521, %v365_v1  ;;  %vm271_vm9 = vcmp.ge.f32.partialorder %v2457_v3, 0.0 }
  0xf2   :  { %v473_v53 = vadd.f32 0.2548296, %v457_v29  ;;  %v456_v55 = vmul.f32 %v2453_v58, %v440_v40  ;;  %v427_v26 = vmul.f32 %v2479_v38, %v411_v45  ;;  %v364_v21 = vmul.f32 1.0614054, %v2506_v61  ;;  %v2029_v54 = vpop.eup %2028 }
  0xf3   :  { %v583_v5 = vsub.f32 1.0, %v567_v37  ;;  %v566_v51 = vmul.f32 %v2462_v63, %v486_v52  ;;  %v410_v32 = vadd.f32 1.4214138, %v394_v12  ;;  %v397_v29 = vmul.f32 %v2494_v25, %v381_v20  ;;  %v2031_v22 = vpop.eup %2030 }
  0xf4   :  { %v489_v24 = vmul.f32 %v2438_v35, %v473_v53  ;;  %v472_v30 = vadd.f32 0.2548296, %v456_v55  ;;  %v443_v41 = vadd.f32 -0.28449672, %v427_v26  ;;  %v380_v1 = vadd.f32 -1.4531521, %v364_v21 }
  0xf5   :  { %v599_v9 = vmul.f32 %v583_v5, %v2345_v14  ;;  %v582_v37 = vsub.f32 1.0, %v566_v51  ;;  %v426_v52 = vmul.f32 %v2488_v18, %v410_v32  ;;  %v413_v53 = vadd.f32 1.4214138, %v397_v29  ;;  %v2033_v51 = vpop.eup %2032 }
  0xf6   :  { %v569_v40 = vmul.f32 %v2476_v19, %v489_v24  ;;  %v488_v35 = vmul.f32 %v2453_v58, %v472_v30  ;;  %v459_v14 = vmul.f32 %v2479_v38, %v443_v41  ;;  %v396_v5 = vmul.f32 %v2506_v61, %v380_v1 }
  0xf7   :  { %v631_v63 = vadd.f32 1.0, %v599_v9  ;;  %v598_v45 = vmul.f32 %v582_v37, %v2349_v15  ;;  %v442_v20 = vadd.f32 -0.28449672, %v426_v52  ;;  %v429_v19 = vmul.f32 %v2494_v25, %v413_v53 }
  0xf8   :  { %v585_v13 = vsub.f32 1.0, %v569_v40  ;;  %v568_v12 = vmul.f32 %v2021_v62, %v488_v35  ;;  %v475_v26 = vadd.f32 0.2548296, %v459_v14  ;;  %v412_v21 = vadd.f32 1.4214138, %v396_v5  ;;  %v2525_v9 = vpop.eup %2034  ;;  %v1904_v35 = vpop.f32.mrf.mxu0 }
  0xf9   :  { %v647_v55 = vmul.f32 %v631_v63, %v2338_v8  ;;  %v630_v24 = vadd.f32 1.0, %v598_v45  ;;  %v458_v30 = vmul.f32 %v2488_v18, %v442_v20  ;;  %v445_v32 = vadd.f32 -0.28449672, %v429_v19 }
  0xfa   :  { %v601_v58 = vmul.f32 %v585_v13, %v2379_v44  ;;  %v584_v15 = vsub.f32 1.0, %v568_v12  ;;  %v302_v29 = vand.u32 2147483647, %v2499_v36  ;;  %v2037_v8 = vpop.eup %2036  ;;  %v491_v40 = vmul.f32 %v2479_v38, %v475_v26 }
  0xfb   :  { %704 = vst [vmem:[#allocation2 + $0x21] sm:$0xff] %v647_v55  ;;  %v2530_v62 = vmul.f32 %v630_v24, %v2351_v16  ;;  %v428_v13 = vmul.f32 %v2506_v61, %v412_v21  ;;  %v474_v41 = vadd.f32 0.2548296, %v458_v30  ;;  %v461_v1 = vmul.f32 %v2494_v25, %v445_v32 }
  0xfc   :  { %v633_v37 = vadd.f32 1.0, %v601_v58  ;;  %v600_v44 = vmul.f32 %v584_v15, %v2387_v47  ;;  %v367_v63 = vmul.f32 1.0614054, %v2525_v9  ;;  %v571_v53 = vmul.f32 %v2029_v54, %v491_v40  ;;  %v217_v58 = vpop.f32.mrf.mxu0 }
  0xfd   :  { %703 = vst [vmem:[#allocation2 + $0x11] sm:$0xff] %v2530_v62  ;;  %v444_v16 = vadd.f32 -0.28449672, %v428_v13  ;;  %v318_v45 = vmul.f32 0.3275911, %v302_v29  ;;  %v490_v38 = vmul.f32 %v2488_v18, %v474_v41  ;;  %v510_v30 = vsub.f32 0.0, %v302_v29 }
  0xfe   :  { %v649_v52 = vmul.f32 %v633_v37, %v2367_v34  ;;  %v632_v14 = vadd.f32 1.0, %v600_v44  ;;  %v477_v5 = vadd.f32 0.2548296, %v461_v1  ;;  %v383_v55 = vadd.f32 -1.4531521, %v367_v63 }
  0xff   :  { %v587_v47 = vsub.f32 1.0, %v571_v53  ;;  %v460_v12 = vmul.f32 %v2506_v61, %v444_v16  ;;  %v334_v20 = vadd.f32 1.0, %v318_v45  ;;  %v570_v24 = vmul.f32 %v2031_v22, %v490_v38 }
 0x100   :  { %706 = vst [vmem:[#allocation2 + $0x41] sm:$0xff] %v649_v52  ;;  %v2543_v19 = vmul.f32 %v632_v14, %v2382_v46  ;;  %v493_v34 = vmul.f32 %v2494_v25, %v477_v5  ;;  %v399_v54 = vmul.f32 %v2525_v9, %v383_v55  ;;  %v2551_v46 = vadd.f32 %v1904_v35, %v2277_v23 }
 0x101   :  { %v603_v18 = vmul.f32 %v587_v47, %v2418_v10  ;;  %v476_v26 = vadd.f32 0.2548296, %v460_v12  ;;  %2040 = vrcp.f32 %v334_v20  ;;  %v586_v21 = vsub.f32 1.0, %v570_v24 }
 0x102   :  { %705 = vst [vmem:[#allocation2 + $0x31] sm:$0xff] %v2543_v19  ;;  %v573_v56 = vmul.f32 %v2033_v51, %v493_v34  ;;  %v415_v15 = vadd.f32 1.4214138, %v399_v54  ;;  %v2555_v32 = vadd.f32 %v2277_v23, %v217_v58  ;;  %v257_v13 = vmul.f32 0.70710677, %v2551_v46  ;;  %v2039_v54 = vpop.eup %2038 }
 0x103   :  { %v635_v22 = vadd.f32 1.0, %v603_v18  ;;  %v492_v25 = vmul.f32 %v2506_v61, %v476_v26  ;;  %v602_v10 = vmul.f32 %v586_v21, %v2422_v17  ;;  %v3341_v44 = vmov -1.0   ;;  %v1907_v61 = vpop.f32.mrf.mxu0 }
 0x104   :  { %v589_v37 = vsub.f32 1.0, %v573_v56  ;;  %v431_v40 = vmul.f32 %v2525_v9, %v415_v15  ;;  %v284_v41 = vsel %vm268_vm8, 1.0, %v3341_v44  ;;  %v2567_v17 = vmul.f32 0.5, %v2443_v48 }
 0x105   :  { %v651_v51 = vmul.f32 %v635_v22, %v2408_v2  ;;  %v572_v1 = vmul.f32 %v2037_v8, %v492_v25  ;;  %v634_v63 = vadd.f32 1.0, %v602_v10  ;;  %v526_v16 = vmul.f32 %v510_v30, %v302_v29  ;;  %v227_v5 = vpop.f32.mrf.mxu0 }
 0x106   :  { %v605_v35 = vmul.f32 %v589_v37, %v2469_v11  ;;  %v447_v52 = vadd.f32 -0.28449672, %v431_v40  ;;  %v305_v45 = vand.u32 2147483647, %v257_v13  ;;  %v2570_v2 = vmul.f32 0.70710677, %v2555_v32 }
 0x107   :  { %708 = vst [vmem:[#allocation2 + $0x61] sm:$0xff] %v651_v51  ;;  %v588_v53 = vsub.f32 1.0, %v572_v1  ;;  %v650_v0 = vmul.f32 %v634_v63, %v2410_v4  ;;  %v287_v3 = vsel %vm271_vm9, 1.0, %v3341_v44  ;;  %vm270_vm10 = vcmp.ge.f32.partialorder %v2499_v36, 0.0  ;;  %v1910_v56 = vpop.f32.mrf.mxu0 }
 0x108   :  { %v637_v8 = vadd.f32 1.0, %v605_v35  ;;  %v463_v14 = vmul.f32 %v2525_v9, %v447_v52  ;;  %v2577_v48 = vmul.f32 0.5, %v2484_v39  ;;  %v321_v11 = vmul.f32 0.3275911, %v305_v45 }
 0x109   :  { %v604_v38 = vmul.f32 %v588_v53, %v284_v41  ;;  %707 = vst [vmem:[#allocation2 + $0x51] sm:$0xff] %v650_v0  ;;  %v513_v47 = vsub.f32 0.0, %v305_v45  ;;  %v304_v4 = vand.u32 2147483647, %v2570_v2  ;;  %v550_v20 = vmul.f32 1.442695, %v526_v16 }
 0x10a   :  { %v653_v29 = vmul.f32 %v637_v8, %v2436_v31  ;;  %v479_v55 = vadd.f32 0.2548296, %v463_v14  ;;  %v337_v24 = vadd.f32 1.0, %v321_v11  ;;  %v233_v34 = vadd.f32 %v1907_v61, %v2277_v23  ;;  %v237_v61 = vpop.f32.mrf.mxu0 }
 0x10b   :  { %v636_v12 = vadd.f32 1.0, %v604_v38  ;;  %v2586_v39 = vsel %vm270_vm10, 1.0, %v3341_v44  ;;  %v320_v18 = vmul.f32 0.3275911, %v304_v4  ;;  %v512_v31 = vsub.f32 0.0, %v304_v4 }
 0x10c   :  { %710 = vst [vmem:[#allocation2 + $0x81] sm:$0xff] %v653_v29  ;;  %v495_v58 = vmul.f32 %v2525_v9, %v479_v55  ;;  %vm273_vm11 = vcmp.ge.f32.partialorder %v257_v13, 0.0  ;;  %2042 = vrcp.f32 %v337_v24  ;;  %v259_v21 = vmul.f32 0.70710677, %v233_v34 }
 0x10d   :  { %v652_v26 = vmul.f32 %v636_v12, %v2451_v57  ;;  %v529_v25 = vmul.f32 %v513_v47, %v305_v45  ;;  %v336_v30 = vadd.f32 1.0, %v320_v18  ;;  %v228_v9 = vadd.f32 %v2277_v23, %v227_v5 }
 0x10e   :  { %v2589_v15 = vpop.eup %2040  ;;  %v575_v22 = vmul.f32 %v2039_v54, %v495_v58  ;;  %2044 = vpow2.f32 %v550_v20  ;;  %v528_v10 = vmul.f32 %v512_v31, %v304_v4  ;;  %v307_v37 = vand.u32 2147483647, %v259_v21 }
 0x10f   :  { %709 = vst [vmem:[#allocation2 + $0x71] sm:$0xff] %v652_v26  ;;  %v366_v36 = vmul.f32 1.0614054, %v2589_v15  ;;  %v2594_v57 = vsel %vm273_vm11, 1.0, %v3341_v44  ;;  %v2597_v13 = vmul.f32 0.5, %v2551_v46  ;;  %2046 = vrcp.f32 %v336_v30 }
 0x110   :  { %v591_v40 = vsub.f32 1.0, %v575_v22  ;;  %vm272_vm12 = vcmp.ge.f32.partialorder %v2570_v2, 0.0  ;;  %v323_v41 = vmul.f32 0.3275911, %v307_v37  ;;  %v515_v1 = vsub.f32 0.0, %v307_v37 }
 0x111   :  { %v382_v51 = vadd.f32 -1.4531521, %v366_v36  ;;  %v556_v35 = vmul.f32 1.442695, %v529_v25  ;;  %v258_v52 = vmul.f32 0.70710677, %v228_v9  ;;  %v243_v53 = vadd.f32 %v1910_v56, %v2277_v23 }
 0x112   :  { %v607_v63 = vmul.f32 %v591_v40, %v287_v3  ;;  %v554_v45 = vmul.f32 1.442695, %v528_v10  ;;  %v339_v0 = vadd.f32 1.0, %v323_v41  ;;  %v531_v8 = vmul.f32 %v515_v1, %v307_v37  ;;  %v862_v25 = vld [vmem:[#allocation2 + $0x10] sm:$0xff] }
 0x113   :  { %v398_v16 = vmul.f32 %v2589_v15, %v382_v51  ;;  %v306_v46 = vand.u32 2147483647, %v258_v52  ;;  %v261_v38 = vmul.f32 0.70710677, %v243_v53  ;;  %v2603_v11 = vadd.f32 %v2277_v23, %v237_v61  ;;  %v2638_v1 = vld [vmem:[#allocation2 + $0x12] sm:$0xff] }
 0x114   :  { %v639_v14 = vadd.f32 1.0, %v607_v63  ;;  %v2608_v3 = vsel %vm272_vm12, 1.0, %v3341_v44  ;;  %v2611_v29 = vmul.f32 0.5, %v2555_v32  ;;  %2048 = vrcp.f32 %v339_v0 }
 0x115   :  { %v414_v5 = vadd.f32 1.4214138, %v398_v16  ;;  %2050 = vpow2.f32 %v556_v35  ;;  %v2614_v47 = vmul.f32 0.5, %v233_v34  ;;  %v322_v4 = vmul.f32 0.3275911, %v306_v46  ;;  %v2642_v16 = vld [vmem:[#allocation2 + $0x20] sm:$0xff] }
 0x116   :  { %v655_v55 = vmul.f32 %v639_v14, %v2567_v17  ;;  %2052 = vpow2.f32 %v554_v45  ;;  %vm275_vm13 = vcmp.ge.f32.partialorder %v259_v21, 0.0  ;;  %v309_v23 = vand.u32 2147483647, %v261_v38 }
 0x117   :  { %v430_v12 = vmul.f32 %v2589_v15, %v414_v5  ;;  %v560_v20 = vmul.f32 1.442695, %v531_v8  ;;  %vm274_vm14 = vcmp.ge.f32.partialorder %v258_v52, 0.0  ;;  %v338_v2 = vadd.f32 1.0, %v322_v4 }
 0x118   :  { %712 = vst [vmem:[#allocation2 + $0xc1] sm:$0xff] %v655_v55  ;;  %v2618_v24 = vmul.f32 0.70710677, %v2603_v11  ;;  %v514_v54 = vsub.f32 0.0, %v306_v46  ;;  %vm277_vm15 = vcmp.ge.f32.partialorder %v261_v38, 0.0  ;;  %v2623_v34 = vsel %vm275_vm13, 1.0, %v3341_v44 }
 0x119   :  { %v446_v32 = vadd.f32 -0.28449672, %v430_v12  ;;  %v325_v17 = vmul.f32 0.3275911, %v309_v23  ;;  %v2620_v58 = vpop.eup %2042  ;;  %2054 = vrcp.f32 %v338_v2  ;;  %v2625_v18 = vmul.f32 0.5, %v228_v9  ;;  %v2656_v2 = vld [vmem:[#allocation2 + $0x22] sm:$0xff] }
 0x11a   :  { %v308_v31 = vand.u32 2147483647, %v2618_v24  ;;  %v369_v21 = vmul.f32 1.0614054, %v2620_v58  ;;  %v2631_v56 = vsel %vm274_vm14, 1.0, %v3341_v44  ;;  %2056 = vpow2.f32 %v560_v20 }
 0x11b   :  { %v462_v26 = vmul.f32 %v2589_v15, %v446_v32  ;;  %v341_v22 = vadd.f32 1.0, %v325_v17  ;;  %v2045_v30 = vpop.eup %2044  ;;  %v2634_v36 = vsel %vm277_vm15, 1.0, %v3341_v44  ;;  %v517_v10 = vsub.f32 0.0, %v309_v23 }
 0x11c   :  { %v324_v37 = vmul.f32 0.3275911, %v308_v31  ;;  %v2636_v9 = vpop.eup %2046  ;;  %v385_v51 = vadd.f32 -1.4531521, %v369_v21  ;;  %v530_v41 = vmul.f32 %v514_v54, %v306_v46  ;;  %v516_v35 = vsub.f32 0.0, %v308_v31  ;;  %v2650_v46 = vld [vmem:[#allocation2 + $0x21] sm:$0xff] }
 0x11d   :  { %v478_v40 = vadd.f32 0.2548296, %v462_v26  ;;  %2058 = vrcp.f32 %v341_v22  ;;  %v368_v61 = vmul.f32 1.0614054, %v2636_v9  ;;  %v882_v52 = vmul.f32 %v2309_v49, %v862_v25 }
 0x11e   :  { %v340_v63 = vadd.f32 1.0, %v324_v37  ;;  %v401_v0 = vmul.f32 %v2620_v58, %v385_v51  ;;  %v2646_v8 = vmul.f32 0.5, %v243_v53  ;;  %v918_v14 = vmul.f32 %v2297_v43, %v2530_v62 }
 0x11f   :  { %v494_v45 = vmul.f32 %v2589_v15, %v478_v40  ;;  %v384_v38 = vadd.f32 -1.4531521, %v368_v61  ;;  %v533_v5 = vmul.f32 %v517_v10, %v309_v23  ;;  %v970_v55 = vmul.f32 %v2323_v59, %v2638_v1  ;;  %v2671_v10 = vld [vmem:[%s3335_s4] ss:$0 sm:$0xff]  ;;  %v759_v61 = vld [vmem:[#allocation2 + $0x11] sm:$0xff] }
 0x120   :  { %2060 = vrcp.f32 %v340_v63  ;;  %v417_v12 = vadd.f32 1.4214138, %v401_v0  ;;  %v934_v20 = vadd.f32 %v918_v14, %v882_v52  ;;  %v1023_v15 = vmul.f32 %v2325_v60, %v2642_v16 }
 0x121   :  { %v574_v4 = vmul.f32 %v2045_v30, %v494_v45  ;;  %v2658_v53 = vpop.eup %2048  ;;  %v400_v62 = vmul.f32 %v2636_v9, %v384_v38  ;;  %v532_v32 = vmul.f32 %v516_v35, %v308_v31  ;;  %v2662_v54 = vmul.f32 0.5, %v2603_v11 }
 0x122   :  { %v1059_v23 = vmul.f32 %v2311_v50, %v2650_v46  ;;  %v2051_v17 = vpop.eup %2050  ;;  %v433_v21 = vmul.f32 %v2620_v58, %v417_v12  ;;  %v371_v22 = vmul.f32 1.0614054, %v2658_v53  ;;  %v986_v30 = vadd.f32 %v970_v55, %v934_v20 }
 0x123   :  { %v590_v26 = vsub.f32 1.0, %v574_v4  ;;  %v2053_v37 = vpop.eup %2052  ;;  %v416_v31 = vadd.f32 1.4214138, %v400_v62  ;;  %v558_v40 = vmul.f32 1.442695, %v530_v41  ;;  %v1111_v51 = vmul.f32 %v2336_v7, %v2656_v2 }
 0x124   :  { %v1075_v11 = vadd.f32 %v1059_v23, %v1023_v15  ;;  %v449_v35 = vadd.f32 -0.28449672, %v433_v21  ;;  %v387_v52 = vadd.f32 -1.4531521, %v371_v22  ;;  %v564_v45 = vmul.f32 1.442695, %v533_v5 }
 0x125   :  { %v606_v63 = vmul.f32 %v590_v26, %v2586_v39  ;;  %v432_v0 = vmul.f32 %v2636_v9, %v416_v31  ;;  %v562_v14 = vmul.f32 1.442695, %v532_v32  ;;  %v1143_v55 = vadd.f32 %v986_v30, %v2334_v6 }
 0x126   :  { %v1127_v38 = vadd.f32 %v1111_v51, %v1075_v11  ;;  %v2678_v4 = vpop.eup %2054  ;;  %v465_v41 = vmul.f32 %v2620_v58, %v449_v35  ;;  %v403_v20 = vmul.f32 %v2658_v53, %v387_v52  ;;  %v743_v15 = vmul.f32 %v862_v25, %v2279_v27 }
 0x127   :  { %v638_v12 = vadd.f32 1.0, %v606_v63  ;;  %v448_v62 = vadd.f32 -0.28449672, %v432_v0  ;;  %v370_v39 = vmul.f32 1.0614054, %v2678_v4  ;;  %v779_v23 = vmul.f32 %v2281_v28, %v759_v61  ;;  %v2057_v32 = vpop.eup %2056 }
 0x128   :  { %v1166_v5 = vadd.f32 %v2671_v10, %v1127_v38  ;;  %v481_v6 = vadd.f32 0.2548296, %v465_v41  ;;  %v419_v21 = vadd.f32 1.4214138, %v403_v20  ;;  %2062 = vpow2.f32 %v558_v40 }
 0x129   :  { %v654_v26 = vmul.f32 %v638_v12, %v2577_v48  ;;  %v464_v30 = vmul.f32 %v2636_v9, %v448_v62  ;;  %v386_v31 = vadd.f32 -1.4531521, %v370_v39  ;;  %2064 = vpow2.f32 %v564_v45 }
 0x12a   :  { %v2687_v22 = vpop.eup %2058  ;;  %v2690_v25 = vadd.f32 %v1166_v5, %v1143_v55  ;;  %v497_v11 = vmul.f32 %v2620_v58, %v481_v6  ;;  %v435_v51 = vmul.f32 %v2658_v53, %v419_v21  ;;  %2066 = vpow2.f32 %v562_v14 }
 0x12b   :  { %711 = vst [vmem:[#allocation2 + $0xb1] sm:$0xff] %v654_v26  ;;  %v373_v61 = vmul.f32 1.0614054, %v2687_v22  ;;  %v480_v48 = vadd.f32 0.2548296, %v464_v30  ;;  %v402_v63 = vmul.f32 %v2678_v4, %v386_v31  ;;  %v795_v35 = vadd.f32 %v779_v23, %v743_v15 }
 0x12c   :  { %v2697_v40 = vmul.f32 0.70710677, %v2690_v25  ;;  %v577_v45 = vmul.f32 %v2051_v17, %v497_v11  ;;  %v451_v0 = vadd.f32 -0.28449672, %v435_v51  ;;  %v831_v58 = vmul.f32 %v2638_v1, %v2295_v42 }
 0x12d   :  { %v2699_v52 = vpop.eup %2060  ;;  %v389_v38 = vadd.f32 -1.4531521, %v373_v61  ;;  %v496_v55 = vmul.f32 %v2636_v9, %v480_v48  ;;  %v418_v12 = vadd.f32 1.4214138, %v402_v63  ;;  %v883_v41 = vmul.f32 %v2642_v16, %v2309_v49  ;;  %v2715_v61 = vld [vmem:[#allocation2 + $0x30] sm:$0xff] }
 0x12e   :  { %v372_v14 = vmul.f32 1.0614054, %v2699_v52  ;;  %v593_v20 = vsub.f32 1.0, %v577_v45  ;;  %v467_v62 = vmul.f32 %v2658_v53, %v451_v0  ;;  %v919_v17 = vmul.f32 %v2650_v46, %v2297_v43 }
 0x12f   :  { %v405_v15 = vmul.f32 %v2687_v22, %v389_v38  ;;  %v576_v39 = vmul.f32 %v2053_v37, %v496_v55  ;;  %v434_v5 = vmul.f32 %v2678_v4, %v418_v12  ;;  %v1246_v9 = vand.u32 2147483647, %v2697_v40 }
 0x130   :  { %v388_v1 = vadd.f32 -1.4531521, %v372_v14  ;;  %v609_v23 = vmul.f32 %v593_v20, %v2594_v57  ;;  %v483_v26 = vadd.f32 0.2548296, %v467_v62  ;;  %v847_v21 = vadd.f32 %v831_v58, %v795_v35 }
 0x131   :  { %v421_v6 = vadd.f32 1.4214138, %v405_v15  ;;  %v592_v30 = vsub.f32 1.0, %v576_v39  ;;  %v450_v31 = vadd.f32 -0.28449672, %v434_v5  ;;  %v935_v45 = vadd.f32 %v919_v17, %v883_v41  ;;  %v2725_v41 = vld [vmem:[#allocation2 + $0x32] sm:$0xff] }
 0x132   :  { %v404_v11 = vmul.f32 %v2699_v52, %v388_v1  ;;  %v1262_v51 = vmul.f32 0.3275911, %v1246_v9  ;;  %v641_v48 = vadd.f32 1.0, %v609_v23  ;;  %v499_v37 = vmul.f32 %v2658_v53, %v483_v26 }
 0x133   :  { %v437_v63 = vmul.f32 %v2687_v22, %v421_v6  ;;  %v608_v0 = vmul.f32 %v592_v30, %v2608_v3  ;;  %v466_v57 = vmul.f32 %v2678_v4, %v450_v31  ;;  %v1024_v14 = vmul.f32 %v2325_v60, %v2715_v61 }
 0x134   :  { %v420_v38 = vadd.f32 1.4214138, %v404_v11  ;;  %v1278_v55 = vadd.f32 1.0, %v1262_v51  ;;  %v657_v35 = vmul.f32 %v641_v48, %v2597_v13  ;;  %v579_v58 = vmul.f32 %v2057_v32, %v499_v37 }
 0x135   :  { %v453_v12 = vadd.f32 -0.28449672, %v437_v63  ;;  %v2063_v20 = vpop.eup %2062  ;;  %v640_v62 = vadd.f32 1.0, %v608_v0  ;;  %v482_v15 = vadd.f32 0.2548296, %v466_v57  ;;  %v971_v13 = vmul.f32 %v2656_v2, %v2323_v59  ;;  %v900_v57 = vld [vmem:[#allocation2 + $0x31] sm:$0xff] }
 0x136   :  { %v436_v53 = vmul.f32 %v2699_v52, %v420_v38  ;;  %2068 = vrcp.f32 %v1278_v55  ;;  %v2065_v3 = vpop.eup %2064  ;;  %714 = vst [vmem:[#allocation2 + $0xe1] sm:$0xff] %v657_v35  ;;  %v595_v17 = vsub.f32 1.0, %v579_v58  ;;  %v1060_v32 = vmul.f32 %v2311_v50, %v2543_v19 }
 0x137   :  { %v469_v39 = vmul.f32 %v2687_v22, %v453_v12  ;;  %v2067_v5 = vpop.eup %2066  ;;  %v656_v1 = vmul.f32 %v640_v62, %v2611_v29  ;;  %v498_v23 = vmul.f32 %v2678_v4, %v482_v15  ;;  %vm276_vm0 = vcmp.ge.f32.partialorder %v2618_v24, 0.0  ;;  %v2746_v12 = vld [vmem:[#allocation2 + $0x40] sm:$0xff] }
 0x138   :  { %v452_v26 = vadd.f32 -0.28449672, %v436_v53  ;;  %v1454_v6 = vsub.f32 0.0, %v1246_v9  ;;  %v611_v30 = vmul.f32 %v595_v17, %v2623_v34  ;;  %v1076_v11 = vadd.f32 %v1060_v32, %v1024_v14  ;;  %v2755_v53 = vld [vmem:[#allocation2 + $0x42] sm:$0xff] }
 0x139   :  { %v485_v31 = vadd.f32 0.2548296, %v469_v39  ;;  %v1112_v51 = vmul.f32 %v2336_v7, %v2725_v41  ;;  %713 = vst [vmem:[#allocation2 + $0xd1] sm:$0xff] %v656_v1  ;;  %v578_v48 = vmul.f32 %v2063_v20, %v498_v23  ;;  %v987_v37 = vadd.f32 %v971_v13, %v935_v45 }
 0x13a   :  { %v468_v19 = vmul.f32 %v2699_v52, %v452_v26  ;;  %v744_v29 = vmul.f32 %v2642_v16, %v2279_v27  ;;  %v643_v4 = vadd.f32 1.0, %v611_v30  ;;  %v780_v34 = vmul.f32 %v2650_v46, %v2281_v28 }
 0x13b   :  { %v501_v63 = vmul.f32 %v2687_v22, %v485_v31  ;;  %v1128_v0 = vadd.f32 %v1112_v51, %v1076_v11  ;;  %v594_v38 = vsub.f32 1.0, %v578_v48  ;;  %v1470_v35 = vmul.f32 %v1454_v6, %v1246_v9  ;;  %v2750_v22 = vld [vmem:[#allocation2 + $0x41] sm:$0xff] }
 0x13c   :  { %v484_v55 = vadd.f32 0.2548296, %v468_v19  ;;  %v884_v58 = vmul.f32 %v2715_v61, %v2309_v49  ;;  %v659_v45 = vmul.f32 %v643_v4, %v2614_v47  ;;  %v1144_v16 = vadd.f32 %v987_v37, %v847_v21 }
 0x13d   :  { %v581_v14 = vmul.f32 %v2065_v3, %v501_v63  ;;  %v1167_v20 = vadd.f32 %v2671_v10, %v1128_v0  ;;  %v610_v62 = vmul.f32 %v594_v38, %v2631_v56  ;;  %v796_v15 = vadd.f32 %v780_v34, %v744_v29 }
 0x13e   :  { %v500_v46 = vmul.f32 %v2699_v52, %v484_v55  ;;  %v920_v9 = vmul.f32 %v2297_v43, %v900_v57  ;;  %716 = vst [vmem:[#allocation2 + $0x101] sm:$0xff] %v659_v45  ;;  %v972_v47 = vmul.f32 %v2725_v41, %v2323_v59  ;;  %v1025_v21 = vmul.f32 %v2325_v60, %v2746_v12 }
 0x13f   :  { %v597_v17 = vsub.f32 1.0, %v581_v14  ;;  %v2757_v39 = vadd.f32 %v1167_v20, %v1144_v16  ;;  %v642_v3 = vadd.f32 1.0, %v610_v62  ;;  %v1061_v52 = vmul.f32 %v2311_v50, %v2750_v22  ;;  %v1006_v20 = vld [vmem:[#allocation2 + $0x50] sm:$0xff] }
 0x140   :  { %v580_v13 = vmul.f32 %v2067_v5, %v500_v46  ;;  %v936_v56 = vadd.f32 %v920_v9, %v884_v58  ;;  %v832_v23 = vmul.f32 %v2656_v2, %v2295_v42  ;;  %v1113_v26 = vmul.f32 %v2336_v7, %v2755_v53  ;;  %v2797_v9 = vld [vmem:[#allocation2 + $0x52] sm:$0xff] }
 0x141   :  { %v613_v32 = vmul.f32 %v597_v17, %v2634_v36  ;;  %v2767_v1 = vmul.f32 0.70710677, %v2757_v39  ;;  %v658_v6 = vmul.f32 %v642_v3, %v2625_v18  ;;  %v1077_v5 = vadd.f32 %v1061_v52, %v1025_v21 }
 0x142   :  { %v596_v30 = vsub.f32 1.0, %v580_v13  ;;  %v988_v31 = vadd.f32 %v972_v47, %v936_v56  ;;  %v292_v36 = vsel %vm276_vm0, 1.0, %v3341_v44  ;;  %v848_v19 = vadd.f32 %v832_v23, %v796_v15 }
 0x143   :  { %v2774_v11 = vpop.eup %2068  ;;  %v645_v51 = vadd.f32 1.0, %v613_v32  ;;  %v1247_v48 = vand.u32 2147483647, %v2767_v1  ;;  %715 = vst [vmem:[#allocation2 + $0xf1] sm:$0xff] %v658_v6  ;;  %v1486_v29 = vmul.f32 1.442695, %v1470_v35  ;;  %v1129_v4 = vadd.f32 %v1113_v26, %v1077_v5 }
 0x144   :  { %v612_v2 = vmul.f32 %v596_v30, %v292_v36  ;;  %v1310_v37 = vmul.f32 1.0614054, %v2774_v11  ;;  %v1145_v0 = vadd.f32 %v988_v31, %v848_v19  ;;  %v745_v34 = vmul.f32 %v2715_v61, %v2279_v27  ;;  %v1042_v61 = vld [vmem:[#allocation2 + $0x51] sm:$0xff]  ;;  %v2816_v5 = vld [vmem:[#allocation2 + $0x60] sm:$0xff] }
 0x145   :  { %v661_v18 = vmul.f32 %v645_v51, %v2646_v8  ;;  %v1263_v63 = vmul.f32 0.3275911, %v1247_v48  ;;  %v1168_v24 = vadd.f32 %v2671_v10, %v1129_v4  ;;  %v781_v58 = vmul.f32 %v900_v57, %v2281_v28  ;;  %v2822_v4 = vld [vmem:[#allocation2 + $0x61] sm:$0xff] }
 0x146   :  { %v644_v38 = vadd.f32 1.0, %v612_v2  ;;  %v1326_v55 = vadd.f32 -1.4531521, %v1310_v37  ;;  %v885_v14 = vmul.f32 %v2746_v12, %v2309_v49  ;;  %2070 = vpow2.f32 %v1486_v29 }
 0x147   :  { %718 = vst [vmem:[#allocation2 + $0x121] sm:$0xff] %v661_v18  ;;  %v1279_v45 = vadd.f32 1.0, %v1263_v63  ;;  %v2790_v16 = vadd.f32 %v1168_v24, %v1145_v0  ;;  %v797_v62 = vadd.f32 %v781_v58, %v745_v34  ;;  %v921_v46 = vmul.f32 %v2750_v22, %v2297_v43  ;;  %v2828_v0 = vld [vmem:[#allocation2 + $0x62] sm:$0xff] }
 0x148   :  { %v660_v35 = vmul.f32 %v644_v38, %v2662_v54  ;;  %v1342_v8 = vmul.f32 %v2774_v11, %v1326_v55  ;;  %v833_v54 = vmul.f32 %v2725_v41, %v2295_v42  ;;  %v1026_v47 = vmul.f32 %v2325_v60, %v1006_v20 }
 0x149   :  { %2072 = vrcp.f32 %v1279_v45  ;;  %v2795_v15 = vmul.f32 0.70710677, %v2790_v16  ;;  %v937_v17 = vadd.f32 %v921_v46, %v885_v14  ;;  %v1062_v21 = vmul.f32 %v2311_v50, %v1042_v61 }
 0x14a   :  { %717 = vst [vmem:[#allocation2 + $0x111] sm:$0xff] %v660_v35  ;;  %v1358_v57 = vadd.f32 1.4214138, %v1342_v8  ;;  %v1455_v13 = vsub.f32 0.0, %v1247_v48  ;;  %v849_v52 = vadd.f32 %v833_v54, %v797_v62  ;;  %v973_v32 = vmul.f32 %v2755_v53, %v2323_v59 }
 0x14b   :  { %v2805_v56 = vand.u32 2147483647, %v2795_v15  ;;  %v1078_v23 = vadd.f32 %v1062_v21, %v1026_v47  ;;  %v1114_v26 = vmul.f32 %v2336_v7, %v2797_v9  ;;  %v746_v30 = vmul.f32 %v2746_v12, %v2279_v27 }
 0x14c   :  { %v1374_v3 = vmul.f32 %v2774_v11, %v1358_v57  ;;  %v782_v31 = vmul.f32 %v2750_v22, %v2281_v28  ;;  %v989_v51 = vadd.f32 %v973_v32, %v937_v17  ;;  %v886_v19 = vmul.f32 %v1006_v20, %v2309_v49  ;;  %v2856_v32 = vld [vmem:[#allocation2 + $0x70] sm:$0xff] }
 0x14d   :  { %v1264_v6 = vmul.f32 0.3275911, %v2805_v56  ;;  %v1130_v36 = vadd.f32 %v1114_v26, %v1078_v23  ;;  %vm1214_vm1 = vcmp.ge.f32.partialorder %v2697_v40, 0.0  ;;  %v1566_v37 = vmul.f32 0.5, %v2690_v25 }
 0x14e   :  { %v1390_v41 = vadd.f32 -0.28449672, %v1374_v3  ;;  %v1146_v18 = vadd.f32 %v989_v51, %v849_v52  ;;  %v922_v22 = vmul.f32 %v1042_v61, %v2297_v43  ;;  %v1027_v63 = vmul.f32 %v2325_v60, %v2816_v5  ;;  %v2863_v51 = vld [vmem:[#allocation2 + $0x71] sm:$0xff] }
 0x14f   :  { %v1280_v29 = vadd.f32 1.0, %v1264_v6  ;;  %v1169_v12 = vadd.f32 %v2671_v10, %v1130_v36  ;;  %v1471_v38 = vmul.f32 %v1455_v13, %v1247_v48  ;;  %v798_v55 = vadd.f32 %v782_v31, %v746_v30 }
 0x150   :  { %v1406_v2 = vmul.f32 %v2774_v11, %v1390_v41  ;;  %v938_v25 = vadd.f32 %v922_v22, %v886_v19  ;;  %v974_v58 = vmul.f32 %v2797_v9, %v2323_v59  ;;  %v1063_v45 = vmul.f32 %v2311_v50, %v2822_v4 }
 0x151   :  { %2074 = vrcp.f32 %v1280_v29  ;;  %v2830_v24 = vadd.f32 %v1169_v12, %v1146_v18  ;;  %v834_v35 = vmul.f32 %v2755_v53, %v2295_v42  ;;  %v1115_v8 = vmul.f32 %v2336_v7, %v2828_v0 }
 0x152   :  { %v1422_v34 = vadd.f32 0.2548296, %v1406_v2  ;;  %v747_v48 = vmul.f32 %v1006_v20, %v2279_v27  ;;  %v990_v57 = vadd.f32 %v974_v58, %v938_v25  ;;  %v1079_v54 = vadd.f32 %v1063_v45, %v1027_v63  ;;  %v2874_v63 = vld [vmem:[#allocation2 + $0x72] sm:$0xff] }
 0x153   :  { %v2071_v62 = vpop.eup %2070  ;;  %v2843_v46 = vmul.f32 0.70710677, %v2830_v24  ;;  %v783_v17 = vmul.f32 %v1042_v61, %v2281_v28  ;;  %v1488_v21 = vmul.f32 1.442695, %v1471_v38  ;;  %v850_v3 = vadd.f32 %v834_v35, %v798_v55 }
 0x154   :  { %v1438_v14 = vmul.f32 %v2774_v11, %v1422_v34  ;;  %v1230_v11 = vsel %vm1214_vm1, 1.0, %v3341_v44  ;;  %vm1215_vm2 = vcmp.ge.f32.partialorder %v2767_v1, 0.0  ;;  %v1131_v52 = vadd.f32 %v1115_v8, %v1079_v54 }
 0x155   :  { %v2854_v13 = vand.u32 2147483647, %v2843_v46  ;;  %v1456_v23 = vsub.f32 0.0, %v2805_v56  ;;  %v1147_v26 = vadd.f32 %v990_v57, %v850_v3  ;;  %v887_v40 = vmul.f32 %v2816_v5, %v2309_v49 }
 0x156   :  { %v2846_v47 = vpop.eup %2072  ;;  %v1518_v53 = vmul.f32 %v2071_v62, %v1438_v14  ;;  %v1170_v30 = vadd.f32 %v2671_v10, %v1131_v52  ;;  %v799_v31 = vadd.f32 %v783_v17, %v747_v48  ;;  %2076 = vpow2.f32 %v1488_v21 }
 0x157   :  { %v1311_v20 = vmul.f32 1.0614054, %v2846_v47  ;;  %v1265_v6 = vmul.f32 0.3275911, %v2854_v13  ;;  %v923_v19 = vmul.f32 %v2822_v4, %v2297_v43  ;;  %v1028_v2 = vmul.f32 %v2325_v60, %v2856_v32 }
 0x158   :  { %v1534_v61 = vsub.f32 1.0, %v1518_v53  ;;  %v2870_v12 = vadd.f32 %v1170_v30, %v1147_v26  ;;  %v835_v22 = vmul.f32 %v2797_v9, %v2295_v42  ;;  %v1472_v38 = vmul.f32 %v1456_v23, %v2805_v56 }
 0x159   :  { %v1327_v41 = vadd.f32 -1.4531521, %v1311_v20  ;;  %v1281_v18 = vadd.f32 1.0, %v1265_v6  ;;  %v939_v55 = vadd.f32 %v923_v19, %v887_v40  ;;  %v1064_v25 = vmul.f32 %v2311_v50, %v2863_v51  ;;  %v1009_v19 = vld [vmem:[#allocation2 + $0x80] sm:$0xff] }
 0x15a   :  { %v1550_v36 = vmul.f32 %v1534_v61, %v1230_v11  ;;  %v2880_v45 = vmul.f32 0.70710677, %v2870_v12  ;;  %v851_v14 = vadd.f32 %v835_v22, %v799_v31  ;;  %v975_v8 = vmul.f32 %v2828_v0, %v2323_v59 }
 0x15b   :  { %v1343_v29 = vmul.f32 %v2846_v47, %v1327_v41  ;;  %2078 = vrcp.f32 %v1281_v18  ;;  %v1080_v9 = vadd.f32 %v1064_v25, %v1028_v2  ;;  %v1116_v48 = vmul.f32 %v2336_v7, %v2874_v63 }
 0x15c   :  { %v1582_v34 = vadd.f32 1.0, %v1550_v36  ;;  %v1231_v56 = vsel %vm1215_vm2, 1.0, %v3341_v44  ;;  %v2893_v54 = vmul.f32 0.5, %v2757_v39  ;;  %v1490_v11 = vmul.f32 1.442695, %v1472_v38 }
 0x15d   :  { %v1359_v58 = vadd.f32 1.4214138, %v1343_v29  ;;  %v991_v53 = vadd.f32 %v975_v8, %v939_v55  ;;  %v1132_v21 = vadd.f32 %v1116_v48, %v1080_v9  ;;  %v1457_v20 = vsub.f32 0.0, %v2854_v13 }
 0x15e   :  { %v1598_v35 = vmul.f32 %v1582_v34, %v1566_v37  ;;  %v2886_v62 = vpop.eup %2074  ;;  %v1250_v37 = vand.u32 2147483647, %v2880_v45  ;;  %v748_v1 = vmul.f32 %v2816_v5, %v2279_v27  ;;  %v784_v26 = vmul.f32 %v2822_v4, %v2281_v28 }
 0x15f   :  { %v1375_v57 = vmul.f32 %v2846_v47, %v1359_v58  ;;  %v1312_v17 = vmul.f32 1.0614054, %v2886_v62  ;;  %v1148_v23 = vadd.f32 %v991_v53, %v851_v14  ;;  %v1171_v39 = vadd.f32 %v2671_v10, %v1132_v21  ;;  %v1097_v14 = vld [vmem:[#allocation2 + $0x82] sm:$0xff] }
 0x160   :  { %1943 = vmatprep.mubr.f32.mxu0 %v1598_v35  ;;  %v1266_v52 = vmul.f32 0.3275911, %v1250_v37  ;;  %v2905_v41 = vmul.f32 0.5, %v2790_v16  ;;  %v888_v30 = vmul.f32 %v2856_v32, %v2309_v49  ;;  %2080 = vpow2.f32 %v1490_v11  ;;  %v1045_v16 = vld [vmem:[#allocation2 + $0x81] sm:$0xff] }
 0x161   :  { %v1391_v3 = vadd.f32 -0.28449672, %v1375_v57  ;;  %v1328_v61 = vadd.f32 -1.4531521, %v1312_v17  ;;  %v2910_v5 = vadd.f32 %v1171_v39, %v1148_v23  ;;  %v924_v36 = vmul.f32 %v2863_v51, %v2297_v43 }
 0x162   :  { %v1282_v6 = vadd.f32 1.0, %v1266_v52  ;;  %vm1216_vm3 = vcmp.ge.f32.partialorder %v2795_v15, 0.0  ;;  %v800_v4 = vadd.f32 %v784_v26, %v748_v1  ;;  %v1473_v18 = vmul.f32 %v1457_v20, %v2854_v13 }
 0x163   :  { %v1407_v40 = vmul.f32 %v2846_v47, %v1391_v3  ;;  %v1344_v31 = vmul.f32 %v2886_v62, %v1328_v61  ;;  %v2917_v22 = vmul.f32 0.70710677, %v2910_v5  ;;  %v836_v34 = vmul.f32 %v2828_v0, %v2295_v42  ;;  %v2077_v38 = vpop.eup %2076 }
 0x164   :  { %2082 = vrcp.f32 %v1282_v6  ;;  %v940_v25 = vadd.f32 %v924_v36, %v888_v30  ;;  %v976_v58 = vmul.f32 %v2874_v63, %v2323_v59  ;;  %v1029_v15 = vmul.f32 %v2325_v60, %v1009_v19 }
 0x165   :  { %v1423_v2 = vadd.f32 0.2548296, %v1407_v40  ;;  %v1360_v29 = vadd.f32 1.4214138, %v1344_v31  ;;  %v2926_v35 = vsel %vm1216_vm3, 1.0, %v3341_v44  ;;  %v1065_v0 = vmul.f32 %v2311_v50, %v1045_v16 }
 0x166   :  { %v2930_v8 = vand.u32 2147483647, %v2917_v22  ;;  %v1458_v48 = vsub.f32 0.0, %v1250_v37  ;;  %v992_v57 = vadd.f32 %v976_v58, %v940_v25  ;;  %v1117_v3 = vmul.f32 %v2336_v7, %v1097_v14 }
 0x167   :  { %v1439_v55 = vmul.f32 %v2846_v47, %v1423_v2  ;;  %v1376_v13 = vmul.f32 %v2886_v62, %v1360_v29  ;;  %v852_v47 = vadd.f32 %v836_v34, %v800_v4  ;;  %v1081_v21 = vadd.f32 %v1065_v0, %v1029_v15 }
 0x168   :  { %v2933_v17 = vpop.eup %2078  ;;  %v1267_v53 = vmul.f32 0.3275911, %v2930_v8  ;;  %v1492_v1 = vmul.f32 1.442695, %v1473_v18  ;;  %v749_v40 = vmul.f32 %v2856_v32, %v2279_v27  ;;  %v1474_v31 = vmul.f32 %v1458_v48, %v1250_v37 }
 0x169   :  { %v1519_v9 = vmul.f32 %v2077_v38, %v1439_v55  ;;  %v1392_v11 = vadd.f32 -0.28449672, %v1376_v13  ;;  %v1313_v52 = vmul.f32 1.0614054, %v2933_v17  ;;  %v1149_v61 = vadd.f32 %v992_v57, %v852_v47 }
 0x16a   :  { %v1283_v39 = vadd.f32 1.0, %v1267_v53  ;;  %v1133_v26 = vadd.f32 %v1117_v3, %v1081_v21  ;;  %v785_v36 = vmul.f32 %v2863_v51, %v2281_v28  ;;  %vm1217_vm4 = vcmp.ge.f32.partialorder %v2843_v46, 0.0  ;;  %v1046_v51 = vld [vmem:[#allocation2 + $0x91] sm:$0xff] }
 0x16b   :  { %v1535_v20 = vsub.f32 1.0, %v1519_v9  ;;  %v1408_v23 = vmul.f32 %v2886_v62, %v1392_v11  ;;  %v1329_v30 = vadd.f32 -1.4531521, %v1313_v52  ;;  %v889_v34 = vmul.f32 %v1009_v19, %v2309_v49  ;;  %v1098_v53 = vld [vmem:[#allocation2 + $0x92] sm:$0xff]  ;;  %v766_v52 = vld [vmem:[#allocation2 + $0xa1] sm:$0xff] }
 0x16c   :  { %2084 = vrcp.f32 %v1283_v39  ;;  %v1172_v4 = vadd.f32 %v2671_v10, %v1133_v26  ;;  %v801_v37 = vadd.f32 %v785_v36, %v749_v40  ;;  %v925_v38 = vmul.f32 %v1045_v16, %v2297_v43 }
 0x16d   :  { %v1551_v6 = vmul.f32 %v1535_v20, %v1231_v56  ;;  %v1424_v2 = vadd.f32 0.2548296, %v1408_v23  ;;  %v1345_v18 = vmul.f32 %v2933_v17, %v1329_v30  ;;  %2086 = vpow2.f32 %v1492_v1  ;;  %v2081_v55 = vpop.eup %2080 }
 0x16e   :  { %v2948_v56 = vadd.f32 %v1172_v4, %v1149_v61  ;;  %v1494_v15 = vmul.f32 1.442695, %v1474_v31  ;;  %v1459_v13 = vsub.f32 0.0, %v2930_v8  ;;  %v941_v48 = vadd.f32 %v925_v38, %v889_v34  ;;  %v818_v34 = vld [vmem:[#allocation2 + $0xa2] sm:$0xff] }
 0x16f   :  { %v1583_v29 = vadd.f32 1.0, %v1551_v6  ;;  %v1440_v32 = vmul.f32 %v2886_v62, %v1424_v2  ;;  %v1361_v58 = vadd.f32 1.4214138, %v1345_v18  ;;  %v837_v62 = vmul.f32 %v2874_v63, %v2295_v42 }
 0x170   :  { %v2956_v19 = vmul.f32 0.70710677, %v2948_v56  ;;  %v1066_v11 = vmul.f32 %v2311_v50, %v1046_v51  ;;  %v977_v63 = vmul.f32 %v1097_v14, %v2323_v59  ;;  %2088 = vpow2.f32 %v1494_v15  ;;  %v2985_v15 = vld [vmem:[#allocation2 + $0xc0] sm:$0xff] }
 0x171   :  { %v1599_v25 = vmul.f32 %v1583_v29, %v2893_v54  ;;  %v2953_v0 = vpop.eup %2082  ;;  %v1520_v9 = vmul.f32 %v2081_v55, %v1440_v32  ;;  %v1377_v16 = vmul.f32 %v2933_v17, %v1361_v58  ;;  %v2132_v54 = vld [vmem:[#allocation2] sm:$0xff]  ;;  %v853_v20 = vadd.f32 %v837_v62, %v801_v37  ;;  %v870_v32 = vld [vmem:[#allocation2 + $0xb0] sm:$0xff] }
 0x172   :  { %v1314_v47 = vmul.f32 1.0614054, %v2953_v0  ;;  %v2963_v57 = vmul.f32 %v2132_v54, %v2325_v60  ;;  %v2967_v3 = vand.u32 2147483647, %v2956_v19  ;;  %v993_v40 = vadd.f32 %v977_v63, %v941_v48  ;;  %v2993_v48 = vld [vmem:[#allocation2 + $0xb2] sm:$0xff] }
 0x173   :  { %1944 = vmatmul.mubr.f32.vlgmr.msra.gmra.mxu0 %v1599_v25  ;;  %v1536_v21 = vsub.f32 1.0, %v1520_v9  ;;  %v1393_v1 = vadd.f32 -0.28449672, %v1377_v16  ;;  %v1118_v6 = vmul.f32 %v2336_v7, %v1098_v53  ;;  %v1475_v36 = vmul.f32 %v1459_v13, %v2930_v8 }
 0x174   :  { %v1330_v61 = vadd.f32 -1.4531521, %v1314_v47  ;;  %v1082_v23 = vadd.f32 %v1066_v11, %v2963_v57  ;;  %v1268_v26 = vmul.f32 0.3275911, %v2967_v3  ;;  %v786_v14 = vmul.f32 %v2281_v28, %v766_v52  ;;  %v2999_v11 = vld [vmem:[#allocation2 + $0xc1] sm:$0xff] }
 0x175   :  { %v1552_v39 = vmul.f32 %v1536_v21, %v2926_v35  ;;  %v1409_v30 = vmul.f32 %v2933_v17, %v1393_v1  ;;  %v1150_v18 = vadd.f32 %v993_v40, %v853_v20  ;;  %v906_v35 = vld [vmem:[#allocation2 + $0xb1] sm:$0xff]  ;;  %v1233_v37 = vsel %vm1217_vm4, 1.0, %v3341_v44 }
 0x176   :  { %v1346_v31 = vmul.f32 %v2953_v0, %v1330_v61  ;;  %v1284_v4 = vadd.f32 1.0, %v1268_v26  ;;  %v1134_v29 = vadd.f32 %v1118_v6, %v1082_v23  ;;  %v1569_v51 = vmul.f32 0.5, %v2830_v24  ;;  %v3009_v23 = vld [vmem:[#allocation2 + $0xc2] sm:$0xff] }
 0x177   :  { %v1584_v2 = vadd.f32 1.0, %v1552_v39  ;;  %v1425_v38 = vadd.f32 0.2548296, %v1409_v30  ;;  %v802_v58 = vadd.f32 %v786_v14, %v2288_v33  ;;  %v838_v62 = vmul.f32 %v2295_v42, %v818_v34 }
 0x178   :  { %v1362_v55 = vadd.f32 1.4214138, %v1346_v31  ;;  %2090 = vrcp.f32 %v1284_v4  ;;  %v1173_v8 = vadd.f32 %v2671_v10, %v1134_v29  ;;  %v890_v24 = vmul.f32 %v2309_v49, %v870_v32 }
 0x179   :  { %v1600_v25 = vmul.f32 %v1584_v2, %v2905_v41  ;;  %v2987_v13 = vpop.eup %2084  ;;  %v1441_v9 = vmul.f32 %v2933_v17, %v1425_v38  ;;  %v1496_v47 = vmul.f32 1.442695, %v1475_v36  ;;  %v926_v54 = vmul.f32 %v2297_v43, %v906_v35 }
 0x17a   :  { %v1378_v46 = vmul.f32 %v2953_v0, %v1362_v55  ;;  %v2087_v41 = vpop.eup %2086  ;;  %v1315_v16 = vmul.f32 1.0614054, %v2987_v13  ;;  %v2996_v33 = vadd.f32 %v1173_v8, %v1150_v18  ;;  %v1460_v21 = vsub.f32 0.0, %v2967_v3 }
 0x17b   :  { %1946 = vmatprep.mubr.f32.mxu0 %v1600_v25  ;;  %v1521_v17 = vmul.f32 %v2087_v41, %v1441_v9  ;;  %v1031_v20 = vmul.f32 %v2325_v60, %v2985_v15  ;;  %v942_v1 = vadd.f32 %v926_v54, %v890_v24  ;;  %v978_v61 = vmul.f32 %v2323_v59, %v2993_v48 }
 0x17c   :  { %v1394_v53 = vadd.f32 -0.28449672, %v1378_v46  ;;  %v1331_v63 = vadd.f32 -1.4531521, %v1315_v16  ;;  %v3005_v52 = vmul.f32 0.70710677, %v2996_v33  ;;  %v854_v40 = vadd.f32 %v838_v62, %v802_v58 }
 0x17d   :  { %v1537_v39 = vsub.f32 1.0, %v1521_v17  ;;  %v1067_v6 = vmul.f32 %v2311_v50, %v2999_v11  ;;  %2092 = vpow2.f32 %v1496_v47  ;;  %v994_v36 = vadd.f32 %v978_v61, %v942_v1  ;;  %v2089_v18 = vpop.eup %2088  ;;  %v3039_v1 = vld [vmem:[#allocation2 + $0xd1] sm:$0xff] }
 0x17e   :  { %v1410_v26 = vmul.f32 %v2953_v0, %v1394_v53  ;;  %v1347_v30 = vmul.f32 %v2987_v13, %v1331_v63  ;;  %v1253_v31 = vand.u32 2147483647, %v3005_v52  ;;  %v1119_v29 = vmul.f32 %v2336_v7, %v3009_v23 }
 0x17f   :  { %v1553_v14 = vmul.f32 %v1537_v39, %v1233_v37  ;;  %v1083_v4 = vadd.f32 %v1067_v6, %v1031_v20  ;;  %vm1218_vm5 = vcmp.ge.f32.partialorder %v2880_v45, 0.0  ;;  %v1476_v38 = vmul.f32 %v1460_v21, %v2967_v3 }
 0x180   :  { %v1426_v2 = vadd.f32 0.2548296, %v1410_v26  ;;  %v1363_v34 = vadd.f32 1.4214138, %v1347_v30  ;;  %v1269_v55 = vmul.f32 0.3275911, %v1253_v31  ;;  %v1151_v9 = vadd.f32 %v994_v36, %v854_v40 }
 0x181   :  { %v1585_v25 = vadd.f32 1.0, %v1553_v14  ;;  %v1135_v58 = vadd.f32 %v1119_v29, %v1083_v4  ;;  %v751_v62 = vmul.f32 %v870_v32, %v2279_v27  ;;  %v787_v24 = vmul.f32 %v906_v35, %v2281_v28 }
 0x182   :  { %v1442_v8 = vmul.f32 %v2953_v0, %v1426_v2  ;;  %v1379_v46 = vmul.f32 %v2987_v13, %v1363_v34  ;;  %v1285_v37 = vadd.f32 1.0, %v1269_v55  ;;  %v1234_v47 = vsel %vm1218_vm5, 1.0, %v3341_v44 }
 0x183   :  { %v1601_v41 = vmul.f32 %v1585_v25, %v1569_v51  ;;  %v1174_v45 = vadd.f32 %v2671_v10, %v1135_v58  ;;  %v1570_v3 = vmul.f32 0.5, %v2870_v12  ;;  %v891_v32 = vmul.f32 %v2985_v15, %v2309_v49  ;;  %v3035_v51 = vld [vmem:[#allocation2 + $0xd0] sm:$0xff] }
 0x184   :  { %v1522_v16 = vmul.f32 %v2089_v18, %v1442_v8  ;;  %v1395_v54 = vadd.f32 -0.28449672, %v1379_v46  ;;  %2094 = vrcp.f32 %v1285_v37  ;;  %v927_v35 = vmul.f32 %v2999_v11, %v2297_v43  ;;  %v3054_v18 = vld [vmem:[#allocation2 + $0xd2] sm:$0xff] }
 0x185   :  { %v3027_v0 = vpop.eup %2090  ;;  %1947 = vmatmul.mubr.f32.gmra.mxu0 %v1601_v41  ;;  %v3029_v53 = vadd.f32 %v1174_v45, %v1151_v9  ;;  %v1498_v20 = vmul.f32 1.442695, %v1476_v38  ;;  %v803_v63 = vadd.f32 %v787_v24, %v751_v62  ;;  %vm1219_vm6 = vcmp.ge.f32.partialorder %v2917_v22, 0.0 }
 0x186   :  { %v1538_v17 = vsub.f32 1.0, %v1522_v16  ;;  %v1411_v21 = vmul.f32 %v2987_v13, %v1395_v54  ;;  %v1316_v12 = vmul.f32 1.0614054, %v3027_v0  ;;  %v1461_v39 = vsub.f32 0.0, %v1253_v31 }
 0x187   :  { %v3043_v26 = vmul.f32 0.70710677, %v3029_v53  ;;  %v839_v30 = vmul.f32 %v2993_v48, %v2295_v42  ;;  %v1032_v36 = vmul.f32 %v2325_v60, %v3035_v51  ;;  %v943_v4 = vadd.f32 %v927_v35, %v891_v32  ;;  %v3069_v32 = vld [vmem:[#allocation2 + $0xe0] sm:$0xff] }
 0x188   :  { %v1554_v61 = vmul.f32 %v1538_v17, %v1234_v47  ;;  %v1427_v40 = vadd.f32 0.2548296, %v1411_v21  ;;  %v1332_v6 = vadd.f32 -1.4531521, %v1316_v12  ;;  %v1068_v29 = vmul.f32 %v2311_v50, %v3039_v1 }
 0x189   :  { %v3050_v2 = vand.u32 2147483647, %v3043_v26  ;;  %2096 = vpow2.f32 %v1498_v20  ;;  %v855_v55 = vadd.f32 %v839_v30, %v803_v63  ;;  %v979_v58 = vmul.f32 %v3009_v23, %v2323_v59  ;;  %v3080_v20 = vld [vmem:[#allocation2 + $0xe1] sm:$0xff] }
 0x18a   :  { %v1586_v14 = vadd.f32 1.0, %v1554_v61  ;;  %v1443_v34 = vmul.f32 %v2987_v13, %v1427_v40  ;;  %v1348_v38 = vmul.f32 %v3027_v0, %v1332_v6  ;;  %v2093_v48 = vpop.eup %2092  ;;  %v1084_v9 = vadd.f32 %v1068_v29, %v1032_v36 }
 0x18b   :  { %v1270_v8 = vmul.f32 0.3275911, %v3050_v2  ;;  %v1477_v62 = vmul.f32 %v1461_v39, %v1253_v31  ;;  %v1120_v24 = vmul.f32 %v2336_v7, %v3054_v18  ;;  %v995_v41 = vadd.f32 %v979_v58, %v943_v4 }
 0x18c   :  { %v1602_v25 = vmul.f32 %v1586_v14, %v1570_v3  ;;  %v1523_v46 = vmul.f32 %v2093_v48, %v1443_v34  ;;  %v1364_v37 = vadd.f32 1.4214138, %v1348_v38  ;;  %v752_v16 = vmul.f32 %v2985_v15, %v2279_v27  ;;  %v3091_v14 = vld [vmem:[#allocation2 + $0xe2] sm:$0xff] }
 0x18d   :  { %v1286_v13 = vadd.f32 1.0, %v1270_v8  ;;  %v788_v45 = vmul.f32 %v2999_v11, %v2281_v28  ;;  %v1571_v3 = vmul.f32 0.5, %v2910_v5  ;;  %v1136_v17 = vadd.f32 %v1120_v24, %v1084_v9 }
 0x18e   :  { %1949 = vmatprep.mubr.f32.mxu0 %v1602_v25  ;;  %v1539_v47 = vsub.f32 1.0, %v1523_v46  ;;  %v1380_v54 = vmul.f32 %v3027_v0, %v1364_v37  ;;  %v1235_v31 = vsel %vm1219_vm6, 1.0, %v3341_v44  ;;  %v1152_v35 = vadd.f32 %v995_v41, %v855_v55 }
 0x18f   :  { %2098 = vrcp.f32 %v1286_v13  ;;  %v892_v15 = vmul.f32 %v3035_v51, %v2309_v49  ;;  %vm1220_vm7 = vcmp.ge.f32.partialorder %v2956_v19, 0.0  ;;  %v1175_v5 = vadd.f32 %v2671_v10, %v1136_v17 }
 0x190   :  { %v1555_v21 = vmul.f32 %v1539_v47, %v1235_v31  ;;  %v1396_v11 = vadd.f32 -0.28449672, %v1380_v54  ;;  %v928_v12 = vmul.f32 %v3039_v1, %v2297_v43  ;;  %v1500_v22 = vmul.f32 1.442695, %v1477_v62 }
 0x191   :  { %v3082_v63 = vpop.eup %2094  ;;  %v1462_v61 = vsub.f32 0.0, %v3050_v2  ;;  %v804_v39 = vadd.f32 %v788_v45, %v752_v16  ;;  %v1033_v40 = vmul.f32 %v2325_v60, %v3069_v32  ;;  %v3089_v10 = vadd.f32 %v1175_v5, %v1152_v35  ;;  %v3116_v35 = vld [vmem:[%s3335_s4] ss:$0 sm:$0xff] }
 0x192   :  { %v1587_v6 = vadd.f32 1.0, %v1555_v21  ;;  %v1412_v30 = vmul.f32 %v3027_v0, %v1396_v11  ;;  %v1317_v36 = vmul.f32 1.0614054, %v3082_v63  ;;  %v840_v4 = vmul.f32 %v3009_v23, %v2295_v42 }
 0x193   :  { %v944_v29 = vadd.f32 %v928_v12, %v892_v15  ;;  %v980_v34 = vmul.f32 %v3054_v18, %v2323_v59  ;;  %v1069_v38 = vmul.f32 %v2311_v50, %v3080_v20  ;;  %v3100_v8 = vmul.f32 0.70710677, %v3089_v10 }
 0x194   :  { %v1603_v55 = vmul.f32 %v1587_v6, %v1571_v3  ;;  %v1428_v48 = vadd.f32 0.2548296, %v1412_v30  ;;  %v1333_v25 = vadd.f32 -1.4531521, %v1317_v36  ;;  %v856_v58 = vadd.f32 %v840_v4, %v804_v39  ;;  %v3134_v30 = vld [vmem:[#allocation2 + $0xf1] sm:$0xff] }
 0x195   :  { %v996_v9 = vadd.f32 %v980_v34, %v944_v29  ;;  %v1085_v46 = vadd.f32 %v1069_v38, %v1033_v40  ;;  %v1121_v37 = vmul.f32 %v2336_v7, %v3091_v14  ;;  %2100 = vpow2.f32 %v1500_v22  ;;  %v3130_v22 = vld [vmem:[#allocation2 + $0xf0] sm:$0xff] }
 0x196   :  { %1950 = vmatmul.mubr.f32.gmra.mxu0 %v1603_v55  ;;  %v1444_v23 = vmul.f32 %v3027_v0, %v1428_v48  ;;  %v1349_v62 = vmul.f32 %v3082_v63, %v1333_v25  ;;  %v1255_v24 = vand.u32 2147483647, %v3100_v8  ;;  %v2097_v13 = vpop.eup %2096  ;;  %v1478_v41 = vmul.f32 %v1462_v61, %v3050_v2  ;;  %v3145_v25 = vld [vmem:[#allocation2 + $0xf2] sm:$0xff] }
 0x197   :  { %v1137_v16 = vadd.f32 %v1121_v37, %v1085_v46  ;;  %v1153_v45 = vadd.f32 %v996_v9, %v856_v58  ;;  %v753_v47 = vmul.f32 %v3035_v51, %v2279_v27  ;;  %v789_v31 = vmul.f32 %v3039_v1, %v2281_v28 }
 0x198   :  { %v1524_v3 = vmul.f32 %v2097_v13, %v1444_v23  ;;  %v1365_v54 = vadd.f32 1.4214138, %v1349_v62  ;;  %v1271_v17 = vmul.f32 0.3275911, %v1255_v24  ;;  %v1572_v0 = vmul.f32 0.5, %v2948_v56 }
 0x199   :  { %v1176_v2 = vadd.f32 %v3116_v35, %v1137_v16  ;;  %v893_v15 = vmul.f32 %v3069_v32, %v2309_v49  ;;  %v929_v5 = vmul.f32 %v3080_v20, %v2297_v43  ;;  %v1236_v56 = vsel %vm1220_vm7, 1.0, %v3341_v44 }
 0x19a   :  { %v1540_v21 = vsub.f32 1.0, %v1524_v3  ;;  %v1381_v51 = vmul.f32 %v3082_v63, %v1365_v54  ;;  %v1287_v11 = vadd.f32 1.0, %v1271_v17  ;;  %vm1221_vm8 = vcmp.ge.f32.partialorder %v3005_v52, 0.0 }
 0x19b   :  { %v1502_v1 = vmul.f32 1.442695, %v1478_v41  ;;  %v3128_v12 = vadd.f32 %v1176_v2, %v1153_v45  ;;  %v805_v6 = vadd.f32 %v789_v31, %v753_v47  ;;  %v1463_v4 = vsub.f32 0.0, %v1255_v24 }
 0x19c   :  { %v3132_v61 = vpop.eup %2098  ;;  %v1556_v39 = vmul.f32 %v1540_v21, %v1236_v56  ;;  %v1397_v40 = vadd.f32 -0.28449672, %v1381_v51  ;;  %2102 = vrcp.f32 %v1287_v11  ;;  %v841_v29 = vmul.f32 %v3054_v18, %v2295_v42 }
 0x19d   :  { %v1318_v36 = vmul.f32 1.0614054, %v3132_v61  ;;  %v3138_v19 = vmul.f32 0.70710677, %v3128_v12  ;;  %v945_v55 = vadd.f32 %v929_v5, %v893_v15  ;;  %v1034_v48 = vmul.f32 %v2325_v60, %v3130_v22 }
 0x19e   :  { %v1588_v34 = vadd.f32 1.0, %v1556_v39  ;;  %v1413_v38 = vmul.f32 %v3082_v63, %v1397_v40  ;;  %2104 = vpow2.f32 %v1502_v1  ;;  %v1070_v46 = vmul.f32 %v2311_v50, %v3134_v30  ;;  %v3170_v39 = vld [vmem:[#allocation2 + $0x101] sm:$0xff] }
 0x19f   :  { %v1334_v58 = vadd.f32 -1.4531521, %v1318_v36  ;;  %v1256_v9 = vand.u32 2147483647, %v3138_v19  ;;  %v857_v62 = vadd.f32 %v841_v29, %v805_v6  ;;  %v981_v18 = vmul.f32 %v3091_v14, %v2323_v59 }
 0x1a0   :  { %v1604_v37 = vmul.f32 %v1588_v34, %v1572_v0  ;;  %v1429_v23 = vadd.f32 0.2548296, %v1413_v38  ;;  %v1086_v16 = vadd.f32 %v1070_v46, %v1034_v48  ;;  %v1122_v45 = vmul.f32 %v2336_v7, %v3145_v25 }
 0x1a1   :  { %v1350_v13 = vmul.f32 %v3132_v61, %v1334_v58  ;;  %v1272_v41 = vmul.f32 0.3275911, %v1256_v9  ;;  %v1479_v3 = vmul.f32 %v1463_v4, %v1255_v24  ;;  %v997_v54 = vadd.f32 %v981_v18, %v945_v55  ;;  %v3166_v24 = vld [vmem:[#allocation2 + $0x100] sm:$0xff] }
 0x1a2   :  { %1952 = vmatprep.mubr.f32.mxu1 %v1604_v37  ;;  %v1445_v47 = vmul.f32 %v3082_v63, %v1429_v23  ;;  %v754_v17 = vmul.f32 %v3069_v32, %v2279_v27  ;;  %v2101_v31 = vpop.eup %2100  ;;  %v1138_v15 = vadd.f32 %v1122_v45, %v1086_v16  ;;  %v790_v21 = vmul.f32 %v3080_v20, %v2281_v28 }
 0x1a3   :  { %v1366_v0 = vadd.f32 1.4214138, %v1350_v13  ;;  %v1288_v2 = vadd.f32 1.0, %v1272_v41  ;;  %v1237_v51 = vsel %vm1221_vm8, 1.0, %v3341_v44  ;;  %v1573_v5 = vmul.f32 0.5, %v2996_v33  ;;  %v3174_v33 = vld [vmem:[#allocation2 + $0x102] sm:$0xff] }
 0x1a4   :  { %v1525_v11 = vmul.f32 %v2101_v31, %v1445_v47  ;;  %v894_v63 = vmul.f32 %v3130_v22, %v2309_v49  ;;  %v1154_v56 = vadd.f32 %v997_v54, %v857_v62  ;;  %v1177_v1 = vadd.f32 %v3116_v35, %v1138_v15 }
 0x1a5   :  { %v1382_v32 = vmul.f32 %v3132_v61, %v1366_v0  ;;  %2106 = vrcp.f32 %v1288_v2  ;;  %v1504_v40 = vmul.f32 1.442695, %v1479_v3  ;;  %v1464_v52 = vsub.f32 0.0, %v1256_v9 }
 0x1a6   :  { %v1541_v20 = vsub.f32 1.0, %v1525_v11  ;;  %v930_v6 = vmul.f32 %v3134_v30, %v2297_v43  ;;  %v3176_v4 = vadd.f32 %v1177_v1, %v1154_v56  ;;  %v806_v29 = vadd.f32 %v790_v21, %v754_v17 }
 0x1a7   :  { %v1398_v36 = vadd.f32 -0.28449672, %v1382_v32  ;;  %v1035_v34 = vmul.f32 %v2325_v60, %v3166_v24  ;;  %v982_v48 = vmul.f32 %v3145_v25, %v2323_v59  ;;  %v1071_v58 = vmul.f32 %v2311_v50, %v3170_v39 }
 0x1a8   :  { %v1557_v38 = vmul.f32 %v1541_v20, %v1237_v51  ;;  %v946_v55 = vadd.f32 %v930_v6, %v894_v63  ;;  %v3188_v23 = vmul.f32 0.70710677, %v3176_v4  ;;  %v842_v62 = vmul.f32 %v3091_v14, %v2295_v42 }
 0x1a9   :  { %v3184_v46 = vpop.eup %2102  ;;  %v1414_v37 = vmul.f32 %v3132_v61, %v1398_v36  ;;  %v1123_v18 = vmul.f32 %v2336_v7, %v3174_v33  ;;  %v1087_v45 = vadd.f32 %v1071_v58, %v1035_v34  ;;  %v1480_v3 = vmul.f32 %v1464_v52, %v1256_v9  ;;  %v3211_v36 = vld [vmem:[#allocation2 + $0x110] sm:$0xff] }
 0x1aa   :  { %v1589_v13 = vadd.f32 1.0, %v1557_v38  ;;  %v1319_v41 = vmul.f32 1.0614054, %v3184_v46  ;;  %v998_v16 = vadd.f32 %v982_v48, %v946_v55  ;;  %v1257_v54 = vand.u32 2147483647, %v3188_v23  ;;  %v3225_v58 = vld [vmem:[#allocation2 + $0x111] sm:$0xff] }
 0x1ab   :  { %v1430_v47 = vadd.f32 0.2548296, %v1414_v37  ;;  %v858_v17 = vadd.f32 %v842_v62, %v806_v29  ;;  %v2105_v31 = vpop.eup %2104  ;;  %vm1222_vm9 = vcmp.ge.f32.partialorder %v3043_v26, 0.0  ;;  %v1139_v15 = vadd.f32 %v1123_v18, %v1087_v45 }
 0x1ac   :  { %v1605_v0 = vmul.f32 %v1589_v13, %v1573_v5  ;;  %v1335_v2 = vadd.f32 -1.4531521, %v1319_v41  ;;  %2108 = vpow2.f32 %v1504_v40  ;;  %v1273_v21 = vmul.f32 0.3275911, %v1257_v54 }
 0x1ad   :  { %v1446_v14 = vmul.f32 %v3132_v61, %v1430_v47  ;;  %v1155_v51 = vadd.f32 %v998_v16, %v858_v17  ;;  %v1178_v63 = vadd.f32 %v3116_v35, %v1139_v15  ;;  %v755_v9 = vmul.f32 %v3130_v22, %v2279_v27  ;;  %v3233_v16 = vld [vmem:[#allocation2 + $0x112] sm:$0xff] }
 0x1ae   :  { %1953 = vmatmul.mubr.f32.vlgmr.msra.gmra.mxu1 %v1605_v0  ;;  %v1351_v11 = vmul.f32 %v3184_v46, %v1335_v2  ;;  %v791_v5 = vmul.f32 %v3134_v30, %v2281_v28  ;;  %v1574_v56 = vmul.f32 0.5, %v3029_v53  ;;  %v1506_v1 = vmul.f32 1.442695, %v1480_v3 }
 0x1af   :  { %v1526_v32 = vmul.f32 %v2105_v31, %v1446_v14  ;;  %v1289_v20 = vadd.f32 1.0, %v1273_v21  ;;  %v3205_v40 = vadd.f32 %v1178_v63, %v1155_v51  ;;  %v895_v52 = vmul.f32 %v3166_v24, %v2309_v49 }
 0x1b0   :  { %v1367_v61 = vadd.f32 1.4214138, %v1351_v11  ;;  %v931_v6 = vmul.f32 %v3170_v39, %v2297_v43  ;;  %v1238_v22 = vsel %vm1222_vm9, 1.0, %v3341_v44  ;;  %v1465_v53 = vsub.f32 0.0, %v1257_v54 }
 0x1b1   :  { %v1542_v30 = vsub.f32 1.0, %v1526_v32  ;;  %2110 = vrcp.f32 %v1289_v20  ;;  %v3220_v38 = vmul.f32 0.5, %v3089_v10  ;;  %v3223_v55 = vmul.f32 0.70710677, %v3205_v40 }
 0x1b2   :  { %v3216_v29 = vpop.eup %2106  ;;  %v1383_v34 = vmul.f32 %v3184_v46, %v1367_v61  ;;  %v807_v48 = vadd.f32 %v791_v5, %v755_v9  ;;  %2112 = vpow2.f32 %v1506_v1  ;;  %v1036_v62 = vmul.f32 %v2325_v60, %v3211_v36  ;;  %v1017_v1 = vld [vmem:[#allocation2 + $0x120] sm:$0xff] }
 0x1b3   :  { %v1558_v37 = vmul.f32 %v1542_v30, %v1238_v22  ;;  %v1320_v26 = vmul.f32 1.0614054, %v3216_v29  ;;  %v1258_v13 = vand.u32 2147483647, %v3223_v55  ;;  %v843_v10 = vmul.f32 %v3145_v25, %v2295_v42 }
 0x1b4   :  { %v1399_v18 = vadd.f32 -0.28449672, %v1383_v34  ;;  %v947_v41 = vadd.f32 %v931_v6, %v895_v52  ;;  %v1481_v3 = vmul.f32 %v1465_v53, %v1257_v54  ;;  %v1072_v17 = vmul.f32 %v2311_v50, %v3225_v58  ;;  %v1053_v34 = vld [vmem:[#allocation2 + $0x121] sm:$0xff] }
 0x1b5   :  { %v1590_v45 = vadd.f32 1.0, %v1558_v37  ;;  %v1336_v47 = vadd.f32 -1.4531521, %v1320_v26  ;;  %v1274_v0 = vmul.f32 0.3275911, %v1258_v13  ;;  %v859_v2 = vadd.f32 %v843_v10, %v807_v48 }
 0x1b6   :  { %v1415_v31 = vmul.f32 %v3184_v46, %v1399_v18  ;;  %v983_v15 = vmul.f32 %v3174_v33, %v2323_v59  ;;  %v1088_v25 = vadd.f32 %v1072_v17, %v1036_v62  ;;  %v1124_v51 = vmul.f32 %v2336_v7, %v3233_v16 }
 0x1b7   :  { %v1606_v14 = vmul.f32 %v1590_v45, %v1574_v56  ;;  %v1352_v21 = vmul.f32 %v3216_v29, %v1336_v47  ;;  %vm1223_vm10 = vcmp.ge.f32.partialorder %v3100_v8, 0.0  ;;  %v1290_v11 = vadd.f32 1.0, %v1274_v0 }
 0x1b8   :  { %v1431_v54 = vadd.f32 0.2548296, %v1415_v31  ;;  %v999_v63 = vadd.f32 %v983_v15, %v947_v41  ;;  %v1140_v5 = vadd.f32 %v1124_v51, %v1088_v25  ;;  %v756_v32 = vmul.f32 %v3166_v24, %v2279_v27  ;;  %v1105_v41 = vld [vmem:[#allocation2 + $0x122] sm:$0xff] }
 0x1b9   :  { %1955 = vmatprep.mubr.f32.mxu1 %v1606_v14  ;;  %v1368_v9 = vadd.f32 1.4214138, %v1352_v21  ;;  %v792_v56 = vmul.f32 %v3170_v39, %v2281_v28  ;;  %v2109_v20 = vpop.eup %2108  ;;  %v1508_v52 = vmul.f32 1.442695, %v1481_v3  ;;  %2114 = vrcp.f32 %v1290_v11 }
 0x1ba   :  { %v1447_v61 = vmul.f32 %v3184_v46, %v1431_v54  ;;  %v896_v6 = vmul.f32 %v3211_v36, %v2309_v49  ;;  %v1156_v30 = vadd.f32 %v999_v63, %v859_v2  ;;  %v1179_v53 = vadd.f32 %v3116_v35, %v1140_v5 }
 0x1bb   :  { %v1384_v22 = vmul.f32 %v3216_v29, %v1368_v9  ;;  %v932_v24 = vmul.f32 %v3225_v58, %v2297_v43  ;;  %v1239_v39 = vsel %vm1223_vm10, 1.0, %v3341_v44  ;;  %v1466_v46 = vsub.f32 0.0, %v1258_v13 }
 0x1bc   :  { %v1527_v48 = vmul.f32 %v2109_v20, %v1447_v61  ;;  %v1037_v37 = vmul.f32 %v2325_v60, %v1017_v1  ;;  %v3259_v62 = vadd.f32 %v1179_v53, %v1156_v30  ;;  %v808_v18 = vadd.f32 %v792_v56, %v756_v32 }
 0x1bd   :  { %v1400_v26 = vadd.f32 -0.28449672, %v1384_v22  ;;  %v948_v10 = vadd.f32 %v932_v24, %v896_v6  ;;  %2116 = vpow2.f32 %v1508_v52  ;;  %v984_v3 = vmul.f32 %v3233_v16, %v2323_v59 }
 0x1be   :  { %v3261_v45 = vpop.eup %2110  ;;  %v1543_v47 = vsub.f32 1.0, %v1527_v48  ;;  %v1073_v8 = vmul.f32 %v2311_v50, %v1053_v34  ;;  %v3269_v60 = vmul.f32 0.70710677, %v3259_v62  ;;  %v844_v0 = vmul.f32 %v3174_v33, %v2295_v42 }
 0x1bf   :  { %v1416_v17 = vmul.f32 %v3216_v29, %v1400_v26  ;;  %v1321_v31 = vmul.f32 1.0614054, %v3261_v45  ;;  %v2113_v2 = vpop.eup %2112  ;;  %v1000_v14 = vadd.f32 %v984_v3, %v948_v10  ;;  %v1125_v25 = vmul.f32 %v2336_v7, %v1105_v41 }
 0x1c0   :  { %v1559_v15 = vmul.f32 %v1543_v47, %v1239_v39  ;;  %v1089_v21 = vadd.f32 %v1073_v8, %v1037_v37  ;;  %v1482_v11 = vmul.f32 %v1466_v46, %v1258_v13  ;;  %v860_v63 = vadd.f32 %v844_v0, %v808_v18  ;;  %v1106_v8 = vld [vmem:[#allocation2 + $0x132] sm:$0xff] }
 0x1c1   :  { %v1432_v51 = vadd.f32 0.2548296, %v1416_v17  ;;  %v1337_v54 = vadd.f32 -1.4531521, %v1321_v31  ;;  %v1259_v5 = vand.u32 2147483647, %v3269_v60  ;;  %v757_v56 = vmul.f32 %v3211_v36, %v2279_v27 }
 0x1c2   :  { %v1591_v9 = vadd.f32 1.0, %v1559_v15  ;;  %v1141_v32 = vadd.f32 %v1125_v25, %v1089_v21  ;;  %v1157_v61 = vadd.f32 %v1000_v14, %v860_v63  ;;  %v793_v52 = vmul.f32 %v3225_v58, %v2281_v28  ;;  %v1054_v27 = vld [vmem:[#allocation2 + $0x131] sm:$0xff] }
 0x1c3   :  { %v1448_v20 = vmul.f32 %v3216_v29, %v1432_v51  ;;  %v1353_v33 = vmul.f32 %v3261_v45, %v1337_v54  ;;  %vm1224_vm11 = vcmp.ge.f32.partialorder %v3138_v19, 0.0  ;;  %v1275_v13 = vmul.f32 0.3275911, %v1259_v5 }
 0x1c4   :  { %v1607_v6 = vmul.f32 %v1591_v9, %v3220_v38  ;;  %v1180_v22 = vadd.f32 %v3116_v35, %v1141_v32  ;;  %v897_v24 = vmul.f32 %v1017_v1, %v2309_v49  ;;  %v1510_v36 = vmul.f32 1.442695, %v1482_v11 }
 0x1c5   :  { %v1528_v30 = vmul.f32 %v2113_v2, %v1448_v20  ;;  %v1369_v53 = vadd.f32 1.4214138, %v1353_v33  ;;  %v1291_v29 = vadd.f32 1.0, %v1275_v13  ;;  %v933_v48 = vmul.f32 %v1053_v34, %v2297_v43 }
 0x1c6   :  { %1956 = vmatmul.mubr.f32.gmra.mxu1 %v1607_v6  ;;  %v3285_v39 = vadd.f32 %v1180_v22, %v1157_v61  ;;  %v2115_v28 = vpop.eup %2114  ;;  %v1240_v38 = vsel %vm1224_vm11, 1.0, %v3341_v44  ;;  %v809_v46 = vadd.f32 %v793_v52, %v757_v56  ;;  %v1074_v49 = vmul.f32 %v2311_v50, %v1054_v27 }
 0x1c7   :  { %v1544_v58 = vsub.f32 1.0, %v1528_v30  ;;  %v1385_v19 = vmul.f32 %v3261_v45, %v1369_v53  ;;  %v1322_v37 = vmul.f32 1.0614054, %v2115_v28  ;;  %2118 = vrcp.f32 %v1291_v29 }
 0x1c8   :  { %v3291_v26 = vmul.f32 0.70710677, %v3285_v39  ;;  %v845_v10 = vmul.f32 %v3233_v16, %v2295_v42  ;;  %v949_v43 = vadd.f32 %v933_v48, %v897_v24  ;;  %v1576_v34 = vmul.f32 0.5, %v3128_v12 }
 0x1c9   :  { %v1560_v1 = vmul.f32 %v1544_v58, %v1240_v38  ;;  %v1401_v18 = vadd.f32 -0.28449672, %v1385_v19  ;;  %v1338_v47 = vadd.f32 -1.4531521, %v1322_v37  ;;  %2120 = vpow2.f32 %v1510_v36 }
 0x1ca   :  { %v1260_v3 = vand.u32 2147483647, %v3291_v26  ;;  %v2117_v17 = vpop.eup %2116  ;;  %v861_v2 = vadd.f32 %v845_v10, %v809_v46  ;;  %v985_v50 = vmul.f32 %v1105_v41, %v2323_v59  ;;  %v1467_v14 = vsub.f32 0.0, %v1259_v5 }
 0x1cb   :  { %v1592_v31 = vadd.f32 1.0, %v1560_v1  ;;  %v1417_v0 = vmul.f32 %v3261_v45, %v1401_v18  ;;  %v1354_v15 = vmul.f32 %v2115_v28, %v1338_v47  ;;  %v1090_v42 = vadd.f32 %v1074_v49, %v2963_v57 }
 0x1cc   :  { %v1276_v21 = vmul.f32 0.3275911, %v1260_v3  ;;  %v1001_v12 = vadd.f32 %v985_v50, %v949_v43  ;;  %v1126_v51 = vmul.f32 %v2336_v7, %v1106_v8  ;;  %vm1225_vm12 = vcmp.ge.f32.partialorder %v3188_v23, 0.0 }
 0x1cd   :  { %v1608_v16 = vmul.f32 %v1592_v31, %v1576_v34  ;;  %v1433_v25 = vadd.f32 0.2548296, %v1417_v0  ;;  %v1370_v54 = vadd.f32 1.4214138, %v1354_v15  ;;  %v1483_v41 = vmul.f32 %v1467_v14, %v1259_v5 }
 0x1ce   :  { %v1292_v11 = vadd.f32 1.0, %v1276_v21  ;;  %v1142_v9 = vadd.f32 %v1126_v51, %v1090_v42  ;;  %v1158_v32 = vadd.f32 %v1001_v12, %v861_v2  ;;  %v1241_v7 = vsel %vm1225_vm12, 1.0, %v3341_v44 }
 0x1cf   :  { %1958 = vmatprep.mubr.f32.mxu1 %v1608_v16  ;;  %v1449_v63 = vmul.f32 %v3261_v45, %v1433_v25  ;;  %v1386_v56 = vmul.f32 %v2115_v28, %v1370_v54  ;;  %v1512_v45 = vmul.f32 1.442695, %v1483_v41  ;;  %v1468_v23 = vsub.f32 0.0, %v1260_v3 }
 0x1d0   :  { %2122 = vrcp.f32 %v1292_v11  ;;  %v1181_v57 = vadd.f32 %v3116_v35, %v1142_v9  ;;  %v1577_v5 = vmul.f32 0.5, %v3176_v4  ;;  %vm1226_vm13 = vcmp.ge.f32.partialorder %v3223_v55, 0.0 }
 0x1d1   :  { %v1529_v59 = vmul.f32 %v2117_v17, %v1449_v63  ;;  %v1402_v20 = vadd.f32 -0.28449672, %v1386_v56  ;;  %2124 = vpow2.f32 %v1512_v45  ;;  %v1484_v46 = vmul.f32 %v1468_v23, %v1260_v3 }
 0x1d2   :  { %v3305_v61 = vadd.f32 %v1181_v57, %v1158_v32  ;;  %v1242_v4 = vsel %vm1226_vm13, 1.0, %v3341_v44  ;;  %v1578_v47 = vmul.f32 0.5, %v3205_v40  ;;  %vm1227_vm14 = vcmp.ge.f32.partialorder %v3269_v60, 0.0 }
 0x1d3   :  { %v1545_v33 = vsub.f32 1.0, %v1529_v59  ;;  %v1418_v52 = vmul.f32 %v2115_v28, %v1402_v20  ;;  %v1514_v34 = vmul.f32 1.442695, %v1484_v46  ;;  %v1243_v11 = vsel %vm1227_vm14, 1.0, %v3341_v44 }
 0x1d4   :  { %v2119_v6 = vpop.eup %2118  ;;  %v3309_v22 = vmul.f32 0.70710677, %v3305_v61  ;;  %v1579_v41 = vmul.f32 0.5, %v3259_v62  ;;  %vm1228_vm15 = vcmp.ge.f32.partialorder %v3291_v26, 0.0 }
 0x1d5   :  { %v1561_v13 = vmul.f32 %v1545_v33, %v1241_v7  ;;  %v1434_v30 = vadd.f32 0.2548296, %v1418_v52  ;;  %v1323_v53 = vmul.f32 1.0614054, %v2119_v6  ;;  %v1244_v45 = vsel %vm1228_vm15, 1.0, %v3341_v44 }
 0x1d6   :  { %v2121_v24 = vpop.eup %2120  ;;  %v1261_v27 = vand.u32 2147483647, %v3309_v22  ;;  %vm1229_vm0 = vcmp.ge.f32.partialorder %v3309_v22, 0.0 }
 0x1d7   :  { %v1593_v35 = vadd.f32 1.0, %v1561_v13  ;;  %v1450_v36 = vmul.f32 %v2115_v28, %v1434_v30  ;;  %v1339_v29 = vadd.f32 -1.4531521, %v1323_v53 }
 0x1d8   :  { %v1277_v38 = vmul.f32 0.3275911, %v1261_v27  ;;  %v1469_v2 = vsub.f32 0.0, %v1261_v27 }
 0x1d9   :  { %v1609_v48 = vmul.f32 %v1593_v35, %v1577_v5  ;;  %v1530_v58 = vmul.f32 %v2121_v24, %v1450_v36  ;;  %v1355_v19 = vmul.f32 %v2119_v6, %v1339_v29  ;;  %v1580_v24 = vmul.f32 0.5, %v3285_v39  ;;  %v1832_v39 = vld [vmem:[%s3337_s6] ss:$0 sm:$0xff]  ;;  %s2158_s6 = smov [#allocation3]  }
 0x1da   :  { %v1293_v37 = vadd.f32 1.0, %v1277_v38  ;;  %v1485_v16 = vmul.f32 %v1469_v2, %v1261_v27  ;;  %v1245_v38 = vsel %vm1229_vm0, 1.0, %v3341_v44  ;;  %s1803_s26 = sshll.u32 %s2158_s6, 4  ;;  %s1804_s26 = int_to_ptr.vmem [resolvable:$true] %s1803_s26 }
 0x1db   :  { %1959 = vmatmul.mubr.f32.gmra.mxu1 %v1609_v48  ;;  %v1546_v49 = vsub.f32 1.0, %v1530_v58  ;;  %v1371_v1 = vadd.f32 1.4214138, %v1355_v19  ;;  %v1581_v19 = vmul.f32 0.5, %v3305_v61  ;;  %s2134_s27 = scalar_lea.vmem %s1804_s26, 2048  ;;  %p2139_p1 = scmp.lt.s32.totalorder %s1804_s26, %s1804_s26 }
 0x1dc   :  { %2126 = vrcp.f32 %v1293_v37  ;;  %v1516_v9 = vmul.f32 1.442695, %v1485_v16  ;;  %p2135_p0 = scmp.ne.s32.totalorder %s1804_s26, %s2134_s27  ;;  %p2140_p2 = scmp.lt.s32.totalorder %s2134_s27, %s2134_s27 }
 0x1dd   :  { %v2123_v18 = vpop.eup %2122  ;;  %v1562_v10 = vmul.f32 %v1546_v49, %v1242_v4  ;;  %v1387_v43 = vmul.f32 %v2119_v6, %v1371_v1  ;;  %2128 = vpow2.f32 %v1514_v34 }
 0x1de   :  { %v1324_v28 = vmul.f32 1.0614054, %v2123_v18  ;;  %v2125_v42 = vpop.eup %2124  ;;  %2130 = vpow2.f32 %v1516_v9  ;;  %p2141_p3 = por %p2140_p2, %p2139_p1 }
 0x1df   :  { %v1594_v55 = vadd.f32 1.0, %v1562_v10  ;;  %v1403_v8 = vadd.f32 -0.28449672, %v1387_v43 }
 0x1e0   :  { %v1340_v17 = vadd.f32 -1.4531521, %v1324_v28  ;;  %p2142_p4 = pnand %p2141_p3, %p2135_p0 }
 0x1e1   :  { %v1610_v31 = vmul.f32 %v1594_v55, %v1578_v47  ;;  %v1419_v0 = vmul.f32 %v2119_v6, %v1403_v8 }
 0x1e2   :  { %v1356_v3 = vmul.f32 %v2123_v18, %v1340_v17 }
 0x1e3   :  { %1961 = vmatprep.mubr.f32.mxu1 %v1610_v31  ;;  %v1435_v50 = vadd.f32 0.2548296, %v1419_v0 }
 0x1e4   :  { %v1372_v15 = vadd.f32 1.4214138, %v1356_v3 }
 0x1e5   :  { %v1451_v14 = vmul.f32 %v2119_v6, %v1435_v50 }
 0x1e6   :  { %v1388_v21 = vmul.f32 %v2123_v18, %v1372_v15 }
 0x1e7   :  { %v1531_v25 = vmul.f32 %v2125_v42, %v1451_v14 }
 0x1e8   :  { %v1404_v12 = vadd.f32 -0.28449672, %v1388_v21 }
 0x1e9   :  { %v2127_v40 = vpop.eup %2126  ;;  %v1547_v51 = vsub.f32 1.0, %v1531_v25 }
 0x1ea   :  { %v1420_v54 = vmul.f32 %v2123_v18, %v1404_v12  ;;  %v1325_v63 = vmul.f32 1.0614054, %v2127_v40  ;;  %v2129_v33 = vpop.eup %2128 }
 0x1eb   :  { %v1563_v32 = vmul.f32 %v1547_v51, %v1243_v11  ;;  %v2131_v29 = vpop.eup %2130 }
 0x1ec   :  { %v1436_v56 = vadd.f32 0.2548296, %v1420_v54  ;;  %v1341_v59 = vadd.f32 -1.4531521, %v1325_v63 }
 0x1ed   :  { %v1595_v57 = vadd.f32 1.0, %v1563_v32 }
 0x1ee   :  { %v1452_v20 = vmul.f32 %v2123_v18, %v1436_v56  ;;  %v1357_v7 = vmul.f32 %v2127_v40, %v1341_v59 }
 0x1ef   :  { %v1611_v60 = vmul.f32 %v1595_v57, %v1579_v41 }
 0x1f0   :  { %v1532_v52 = vmul.f32 %v2129_v33, %v1452_v20  ;;  %v1373_v6 = vadd.f32 1.4214138, %v1357_v7 }
 0x1f1   :  { %1962 = vmatmul.mubr.f32.gmra.mxu1 %v1611_v60 }
 0x1f2   :  { %v1548_v13 = vsub.f32 1.0, %v1532_v52  ;;  %v1389_v30 = vmul.f32 %v2127_v40, %v1373_v6 }
 0x1f4   :  { %v1564_v53 = vmul.f32 %v1548_v13, %v1244_v45  ;;  %v1405_v23 = vadd.f32 -0.28449672, %v1389_v30 }
 0x1f6   :  { %v1596_v62 = vadd.f32 1.0, %v1564_v53  ;;  %v1421_v5 = vmul.f32 %v2127_v40, %v1405_v23 }
 0x1f8   :  { %v1612_v35 = vmul.f32 %v1596_v62, %v1580_v24  ;;  %v1437_v27 = vadd.f32 0.2548296, %v1421_v5 }
 0x1fa   :  { %1964 = vmatprep.mubr.f32.mxu1 %v1612_v35  ;;  %v1453_v36 = vmul.f32 %v2127_v40, %v1437_v27 }
 0x1fc   :  { %v1533_v26 = vmul.f32 %v2131_v29, %v1453_v36 }
 0x1fe   :  { %v1549_v48 = vsub.f32 1.0, %v1533_v26 }
 0x200   :  { %v1565_v58 = vmul.f32 %v1549_v48, %v1245_v38 }
 0x202   :  { %v1597_v46 = vadd.f32 1.0, %v1565_v58 }
 0x204   :  { %v1613_v37 = vmul.f32 %v1597_v46, %v1581_v19 }
 0x206   :  { %1965 = vmatmul.mubr.f32.gmra.mxu1 %v1613_v37 }
 0x233   :  { %v1945_v49 = vpop.f32.mrf.mxu0 }
 0x234   :  { %v1709_v1 = vadd.f32 %v1945_v49, %v1832_v39 }
 0x235   :  { %v1703_v18 = vpop.f32.mrf.mxu0 }
 0x236   :  { %1783 = vst [vmem:[#allocation3 + $0x8] sm:$0xff] %v1709_v1  ;;  %v1704_v4 = vadd.f32 %v1832_v39, %v1703_v18 }
 0x238   :  { %1782 = vst [vmem:[#allocation3] sm:$0xff] %v1704_v4 }
 0x245   :  { %v1948_v22 = vpop.f32.mrf.mxu0 }
 0x246   :  { %v1719_v10 = vadd.f32 %v1948_v22, %v1832_v39 }
 0x247   :  { %v1713_v43 = vpop.f32.mrf.mxu0 }
 0x248   :  { %1785 = vst [vmem:[#allocation3 + $0x18] sm:$0xff] %v1719_v10  ;;  %v1714_v44 = vadd.f32 %v1832_v39, %v1713_v43 }
 0x24a   :  { %1784 = vst [vmem:[#allocation3 + $0x10] sm:$0xff] %v1714_v44 }
 0x256   :  { %v1951_v61 = vpop.f32.mrf.mxu0 }
 0x257   :  { %v1729_v28 = vadd.f32 %v1951_v61, %v1832_v39 }
 0x258   :  { %v1723_v34 = vpop.f32.mrf.mxu0 }
 0x259   :  { %1787 = vst [vmem:[#allocation3 + $0x28] sm:$0xff] %v1729_v28  ;;  %v1724_v47 = vadd.f32 %v1832_v39, %v1723_v34 }
 0x25b   :  { %1786 = vst [vmem:[#allocation3 + $0x20] sm:$0xff] %v1724_v47 }
 0x26e   :  { %v1954_v55 = vpop.f32.mrf.mxu1 }
 0x26f   :  { %v1739_v8 = vadd.f32 %v1954_v55, %v1832_v39 }
 0x270   :  { %v1733_v17 = vpop.f32.mrf.mxu1 }
 0x271   :  { %1789 = vst [vmem:[#allocation3 + $0x38] sm:$0xff] %v1739_v8  ;;  %v1734_v31 = vadd.f32 %v1832_v39, %v1733_v17 }
 0x273   :  { %1788 = vst [vmem:[#allocation3 + $0x30] sm:$0xff] %v1734_v31 }
 0x286   :  { %v1957_v0 = vpop.f32.mrf.mxu1 }
 0x287   :  { %v1749_v3 = vadd.f32 %v1957_v0, %v1832_v39 }
 0x288   :  { %v1743_v2 = vpop.f32.mrf.mxu1 }
 0x289   :  { %1791 = vst [vmem:[#allocation3 + $0x48] sm:$0xff] %v1749_v3  ;;  %v1744_v50 = vadd.f32 %v1832_v39, %v1743_v2 }
 0x28b   :  { %1790 = vst [vmem:[#allocation3 + $0x40] sm:$0xff] %v1744_v50 }
 0x29b   :  { %v1960_v15 = vpop.f32.mrf.mxu1 }
 0x29c   :  { %v1759_v14 = vadd.f32 %v1960_v15, %v1832_v39 }
 0x29d   :  { %v1753_v21 = vpop.f32.mrf.mxu1 }
 0x29e   :  { %1793 = vst [vmem:[#allocation3 + $0x58] sm:$0xff] %v1759_v14  ;;  %v1754_v42 = vadd.f32 %v1832_v39, %v1753_v21 }
 0x2a0   :  { %1792 = vst [vmem:[#allocation3 + $0x50] sm:$0xff] %v1754_v42 }
 0x2b1   :  { %v1963_v16 = vpop.f32.mrf.mxu1 }
 0x2b2   :  { %v1769_v25 = vadd.f32 %v1963_v16, %v1832_v39 }
 0x2b3   :  { %v1763_v12 = vpop.f32.mrf.mxu1 }
 0x2b4   :  { %1795 = vst [vmem:[#allocation3 + $0x68] sm:$0xff] %v1769_v25  ;;  %v1764_v40 = vadd.f32 %v1832_v39, %v1763_v12 }
 0x2b6   :  { %1794 = vst [vmem:[#allocation3 + $0x60] sm:$0xff] %v1764_v40 }
 0x2c6   :  { %v1966_v51 = vpop.f32.mrf.mxu1 }
 0x2c7   :  { %v1779_v54 = vadd.f32 %v1966_v51, %v1832_v39 }
 0x2c8   :  { %v1773_v11 = vpop.f32.mrf.mxu1 }
 0x2c9   :  { %1797 = vst [vmem:[#allocation3 + $0x78] sm:$0xff] %v1779_v54  ;;  %v1774_v63 = vadd.f32 %v1832_v39, %v1773_v11 }
 0x2cb   :  { %1796 = vst [vmem:[#allocation3 + $0x70] sm:$0xff] %v1774_v63 }
 0x2cc   :  { %2145 = shalt.err (!%p2142_p4)
}
 0x2cd   :  { %s2159_s28 = smov 128   ;;  %s2160_s29 = smov 8  }
 0x2ce   :  { %1809 = dma.vmem_to_hbm [thread:$0]  %s1804_s26, 2048, %s3338_s7, [#allocation4], %s2159_s28, %s2159_s28, %s2160_s29  }
 0x2cf   :  { %2154 = dma.done.wait [#allocation4], 2048  }
 0x2d0   :  { %2155 = vsyncadd [#allocation4], 4294965248 }
 0x2d1   :  { %1813 = vsyncpa [#allocation4], 1 }

</bundles_post_ra>
